<compile_context>
chip_gen: v7x
topology: tpu7x:2x2x1
jax: 0.10.0
libtpu: 0.0.40
codegen_flags: <defaults>
</compile_context>

<pallas_src>
import jax
import jax.numpy as jnp
from jax.experimental import pallas as pl
from jax.experimental.pallas import tpu as pltpu

GROUPS = 8
EPS = 1e-5


def _resblock_kernel(x_ref, temb_ref,
                     w1_ref, b1_ref, w2_ref, b2_ref, ws_ref, bs_ref,
                     g1_ref, be1_ref, g2_ref, be2_ref,
                     ain_ref, aout_ref,
                     o_ref,
                     pad1_ref, pad2_ref):
    Cin = x_ref.shape[1]
    HW = x_ref.shape[2]
    Cout = o_ref.shape[1]
    PADW = pad1_ref.shape[1]            # HW + 2*W + 2
    W = (PADW - HW - 2) // 2
    OFF = W + 1                         # interior starts at this lane

    def silu(v):
        # sigmoid = 1 / (1 + exp(-v)): exp and approx reciprocal both land on
        # the EUP slot, keeping the chain off the VALU/store path (v5e).
        return v * pl.reciprocal(1.0 + jnp.exp(-v), approx=True)

    def group_norm(h, agg_ref, gamma_ref, beta_ref):
        # h: (C, HW) f32.  Per-channel stats via a lane reduce, group
        # aggregation via a tiny precomputed (C, C) averaging matrix.
        # Stats stay in f32.
        ch_mean = jnp.mean(h, axis=1, keepdims=True)            # (C, 1)
        ch_msq = jnp.mean(h * h, axis=1, keepdims=True)         # (C, 1)
        g_mean = jnp.dot(agg_ref[...], ch_mean,
                         preferred_element_type=jnp.float32)    # (C, 1)
        g_msq = jnp.dot(agg_ref[...], ch_msq,
                        preferred_element_type=jnp.float32)
        var = g_msq - g_mean * g_mean
        scale = jax.lax.rsqrt(var + EPS) * gamma_ref[...]       # fold gamma
        return (h - g_mean) * scale + beta_ref[...]

    # x-direction wrap masks (depend only on x = pixel % W).
    p_iota = jax.lax.broadcasted_iota(jnp.int32, (1, HW), 1)
    if (W & (W - 1)) == 0:
        px = p_iota & (W - 1)
    else:
        px = p_iota % W
    m_left = px != 0              # taps shifted one pixel to the left
    m_right = px != (W - 1)       # taps shifted one pixel to the right

    def conv3x3(pad_ref, h, w_ref, b_ref):
        C = h.shape[0]
        # Zero only the (W+1)-lane halo borders; the interior is fully
        # overwritten every grid step (no full-buffer re-zeroing, and safe
        # under megacore sharding of the batch axis).
        pad_ref[:, 0:OFF] = jnp.zeros((C, OFF), jnp.float32)
        pad_ref[:, OFF + HW:] = jnp.zeros((C, OFF), jnp.float32)
        pad_ref[:, OFF:OFF + HW] = h
        patches = []
        for k in range(9):
            dy, dx = k // 3, k % 3
            s = dy * W + dx                       # static lane offset
            patch = pad_ref[:, s:s + HW]          # (C, HW) shifted view
            if dx == 0:
                patch = jnp.where(m_left, patch, 0.0)
            elif dx == 2:
                patch = jnp.where(m_right, patch, 0.0)
            patches.append(patch)
        # One im2col matmul per conv: (Cout, 9C) @ (9C, HW), bf16 in, f32 acc.
        imcol = jnp.concatenate(patches, axis=0).astype(jnp.bfloat16)
        return jnp.dot(w_ref[...], imcol,
                       preferred_element_type=jnp.float32) + b_ref[...]

    x = x_ref[0]                                                # (Cin, HW) f32

    # h = conv1(silu(norm1(x)))
    h = silu(group_norm(x, ain_ref, g1_ref, be1_ref))
    h = conv3x3(pad1_ref, h, w1_ref, b1_ref)                    # (Cout, HW)

    # h = h + time_mlp(t)[:, :, None, None]  (temb precomputed in the wrapper)
    h = h + temb_ref[0]

    # h = conv2(dropout(silu(norm2(h))))
    # TODO(synk): nn.Dropout implemented as identity (inference/eval mode).
    h = silu(group_norm(h, aout_ref, g2_ref, be2_ref))
    h = conv3x3(pad2_ref, h, w2_ref, b2_ref)

    # shortcut: 1x1 conv (in_channels != out_channels)
    sc = jnp.dot(ws_ref[...], x.astype(jnp.bfloat16),
                 preferred_element_type=jnp.float32) + bs_ref[...]

    o_ref[...] = (h + sc).reshape(1, Cout, HW).astype(o_ref.dtype)


def residual_block_forward(x_nchw, t, params):
    """x_nchw: (B, Cin, H, W) f32 (PyTorch layout), t: (B, time_dim) f32."""
    B, Cin, H, W = x_nchw.shape
    Cout = params["w1"].shape[-1]
    HW = H * W

    x_flat = x_nchw.reshape(B, Cin, HW)

    # conv weights: HWIO (3,3,Ci,Co) -> im2col (Co, 9*Ci); bf16 MXU operands.
    def im2col_w(w):
        co = w.shape[-1]
        return jnp.transpose(w, (3, 0, 1, 2)).reshape(co, -1).astype(jnp.bfloat16)

    w1 = im2col_w(params["w1"])
    w2 = im2col_w(params["w2"])
    ws = jnp.transpose(params["ws"]).astype(jnp.bfloat16)        # (Cout, Cin)

    # time_mlp = SiLU -> Linear, computed once for the whole batch.
    temb = jnp.dot(jax.nn.silu(t), params["wt"]) + params["bt"]
    temb = temb.reshape(B, Cout, 1).astype(jnp.float32)

    col = lambda v: v.reshape(-1, 1).astype(jnp.float32)
    b1, b2, bs = col(params["b1"]), col(params["b2"]), col(params["bs"])
    g1, be1 = col(params["g1"]), col(params["be1"])
    g2, be2 = col(params["g2"]), col(params["be2"])

    def full(shape):
        nd = len(shape)
        return pl.BlockSpec(shape, lambda b, _nd=nd: (0,) * _nd)

    in_specs = [
        pl.BlockSpec((1, Cin, HW), lambda b: (b, 0, 0)),   # x (lane-dense)
        pl.BlockSpec((1, Cout, 1), lambda b: (b, 0, 0)),   # temb
        full((Cout, 9 * Cin)), full((Cout, 1)),            # conv1 w, b
        full((Cout, 9 * Cout)), full((Cout, 1)),           # conv2 w, b
        full((Cout, Cin)), full((Cout, 1)),                # shortcut w, b
        full((Cin, 1)), full((Cin, 1)),                    # norm1 gamma, beta
        full((Cout, 1)), full((Cout, 1)),                  # norm2 gamma, beta
        full((Cin, Cin)), full((Cout, Cout)),              # group-avg matrices
    ]
    out_specs = pl.BlockSpec((1, Cout, HW), lambda b: (b, 0, 0))

    out_flat = pl.pallas_call(
        _resblock_kernel,
        out_shape=jax.ShapeDtypeStruct((B, Cout, HW), jnp.float32),
        grid_spec=pltpu.PrefetchScalarGridSpec(
            num_scalar_prefetch=0,
            grid=(B,),
            in_specs=in_specs,
            out_specs=out_specs,
            scratch_shapes=[
                pltpu.VMEM((Cin, HW + 2 * W + 2), jnp.float32),
                pltpu.VMEM((Cout, HW + 2 * W + 2), jnp.float32),
            ],
        ),
        compiler_params=pltpu.CompilerParams(
            dimension_semantics=("parallel",)),   # batch shards over v7x's 2 TCs
    )(x_flat, temb, w1, b1, w2, b2, ws, bs, g1, be1, g2, be2,
      params["a_in"], params["a_out"])

    return out_flat.reshape(B, Cout, H, W)


def group_avg_matrix(C, groups):
    gs = C // groups
    idx = jnp.arange(C)
    same = (idx[:, None] // gs) == (idx[None, :] // gs)
    return same.astype(jnp.float32) / gs


def ref_forward(x_nhwc, t, p):
    """Pure-JAX reference (NHWC), mirrors the PyTorch forward in eval mode."""
    def gn(h, gamma, beta):
        B, H, W, C = h.shape
        gs = C // GROUPS
        hr = h.reshape(B, H, W, GROUPS, gs)
        m = hr.mean(axis=(1, 2, 4), keepdims=True)
        v = jnp.mean((hr - m) ** 2, axis=(1, 2, 4), keepdims=True)
        hr = (hr - m) * jax.lax.rsqrt(v + EPS)
        return hr.reshape(B, H, W, C) * gamma + beta

    def conv3(h, w, b):
        y = jax.lax.conv_general_dilated(
            h, w, window_strides=(1, 1), padding=((1, 1), (1, 1)),
            dimension_numbers=("NHWC", "HWIO", "NHWC"))
        return y + b

    h = jax.nn.silu(gn(x_nhwc, p["g1"], p["be1"]))
    h = conv3(h, p["w1"], p["b1"])
    temb = jax.nn.silu(t) @ p["wt"] + p["bt"]
    h = h + temb[:, None, None, :]
    h = jax.nn.silu(gn(h, p["g2"], p["be2"]))
    h = conv3(h, p["w2"], p["b2"])
    sc = jnp.einsum("bhwc,co->bhwo", x_nhwc, p["ws"]) + p["bs"]
    return h + sc


if __name__ == "__main__":
    B, Cin, Cout, H, W, Td = 2, 16, 32, 16, 16, 32

    key = jax.random.PRNGKey(0)
    k = jax.random.split(key, 16)
    params = dict(
        w1=jax.random.normal(k[0], (3, 3, Cin, Cout), jnp.float32) * 0.05,
        b1=jax.random.normal(k[1], (Cout,), jnp.float32) * 0.05,
        w2=jax.random.normal(k[2], (3, 3, Cout, Cout), jnp.float32) * 0.05,
        b2=jax.random.normal(k[3], (Cout,), jnp.float32) * 0.05,
        ws=jax.random.normal(k[4], (Cin, Cout), jnp.float32) * 0.1,
        bs=jax.random.normal(k[5], (Cout,), jnp.float32) * 0.05,
        g1=1.0 + 0.1 * jax.random.normal(k[6], (Cin,), jnp.float32),
        be1=0.1 * jax.random.normal(k[7], (Cin,), jnp.float32),
        g2=1.0 + 0.1 * jax.random.normal(k[8], (Cout,), jnp.float32),
        be2=0.1 * jax.random.normal(k[9], (Cout,), jnp.float32),
        wt=jax.random.normal(k[10], (Td, Cout), jnp.float32) * 0.1,
        bt=jax.random.normal(k[11], (Cout,), jnp.float32) * 0.05,
        a_in=group_avg_matrix(Cin, GROUPS),
        a_out=group_avg_matrix(Cout, GROUPS),
    )

    # PyTorch-convention inputs (NCHW) go straight into the kernel wrapper.
    x_nchw = jax.random.normal(k[12], (B, Cin, H, W), jnp.float32)
    t = jax.random.normal(k[13], (B, Td), jnp.float32)

    out = residual_block_forward(x_nchw, t, params)
    out = jax.block_until_ready(out)
    assert out.shape == (B, Cout, H, W)

    x_nhwc = jnp.transpose(x_nchw, (0, 2, 3, 1))
    ref_nhwc = jax.block_until_ready(ref_forward(x_nhwc, t, params))
    ref_nchw = jnp.transpose(ref_nhwc, (0, 3, 1, 2))

    max_err = float(jnp.max(jnp.abs(out - ref_nchw)))
    if max_err > 5e-2:
        raise AssertionError(f"mismatch vs reference: max_err={max_err}")

    print("KERNEL_OK")
</pallas_src>

<mosaic_0001>
module attributes {stable_mosaic.version = 11 : i64} {
  func.func @_resblock_kernel(%arg0: i32, %arg1: memref<1x16x256xf32, #tpu.memory_space<vmem>>, %arg2: memref<1x32x1xf32, #tpu.memory_space<vmem>>, %arg3: memref<32x144xbf16, #tpu.memory_space<vmem>>, %arg4: memref<32x1xf32, #tpu.memory_space<vmem>>, %arg5: memref<32x288xbf16, #tpu.memory_space<vmem>>, %arg6: memref<32x1xf32, #tpu.memory_space<vmem>>, %arg7: memref<32x16xbf16, #tpu.memory_space<vmem>>, %arg8: memref<32x1xf32, #tpu.memory_space<vmem>>, %arg9: memref<16x1xf32, #tpu.memory_space<vmem>>, %arg10: memref<16x1xf32, #tpu.memory_space<vmem>>, %arg11: memref<32x1xf32, #tpu.memory_space<vmem>>, %arg12: memref<32x1xf32, #tpu.memory_space<vmem>>, %arg13: memref<16x16xf32, #tpu.memory_space<vmem>>, %arg14: memref<32x32xf32, #tpu.memory_space<vmem>>, %arg15: memref<1x32x256xf32, #tpu.memory_space<vmem>>, %arg16: memref<16x290xf32, #tpu.memory_space<vmem>>, %arg17: memref<32x290xf32, #tpu.memory_space<vmem>>) attributes {dimension_semantics = [#tpu.dimension_semantics<parallel>], iteration_bounds = array<i64: 2>, scalar_prefetch = 0 : i64, scratch_operands = 2 : i64, tpu.core_type = #tpu.core_type<tc>, window_params = [{transform_indices = @transform_0, window_bounds = array<i64: 1, 16, 256>}, {transform_indices = @transform_1, window_bounds = array<i64: 1, 32, 1>}, {pipeline_mode = #tpu.pipeline_mode<synchronous>, transform_indices = @transform_2, window_bounds = array<i64: 32, 144>}, {pipeline_mode = #tpu.pipeline_mode<synchronous>, transform_indices = @transform_3, window_bounds = array<i64: 32, 1>}, {pipeline_mode = #tpu.pipeline_mode<synchronous>, transform_indices = @transform_4, window_bounds = array<i64: 32, 288>}, {pipeline_mode = #tpu.pipeline_mode<synchronous>, transform_indices = @transform_5, window_bounds = array<i64: 32, 1>}, {pipeline_mode = #tpu.pipeline_mode<synchronous>, transform_indices = @transform_6, window_bounds = array<i64: 32, 16>}, {pipeline_mode = #tpu.pipeline_mode<synchronous>, transform_indices = @transform_7, window_bounds = array<i64: 32, 1>}, {pipeline_mode = #tpu.pipeline_mode<synchronous>, transform_indices = @transform_8, window_bounds = array<i64: 16, 1>}, {pipeline_mode = #tpu.pipeline_mode<synchronous>, transform_indices = @transform_9, window_bounds = array<i64: 16, 1>}, {pipeline_mode = #tpu.pipeline_mode<synchronous>, transform_indices = @transform_10, window_bounds = array<i64: 32, 1>}, {pipeline_mode = #tpu.pipeline_mode<synchronous>, transform_indices = @transform_11, window_bounds = array<i64: 32, 1>}, {pipeline_mode = #tpu.pipeline_mode<synchronous>, transform_indices = @transform_12, window_bounds = array<i64: 16, 16>}, {pipeline_mode = #tpu.pipeline_mode<synchronous>, transform_indices = @transform_13, window_bounds = array<i64: 32, 32>}, {transform_indices = @transform_14, window_bounds = array<i64: 1, 32, 256>}]} {
    %0 = tpu.iota {dimensions = array<i32: 1>} : vector<1x256xi32>
    %c15_i32 = arith.constant 15 : i32
    %1 = vector.broadcast %c15_i32 : i32 to vector<1x256xi32>
    %2 = arith.andi %0, %1 : vector<1x256xi32>
    %c0_i32 = arith.constant 0 : i32
    %3 = vector.broadcast %c0_i32 : i32 to vector<1x256xi32>
    %4 = arith.cmpi ne, %2, %3 : vector<1x256xi32>
    %c15_i32_0 = arith.constant 15 : i32
    %5 = vector.broadcast %c15_i32_0 : i32 to vector<1x256xi32>
    %6 = arith.cmpi ne, %2, %5 : vector<1x256xi32>
    %c0 = arith.constant 0 : index
    %c0_1 = arith.constant 0 : index
    %c0_2 = arith.constant 0 : index
    %7 = vector.load %arg1[%c0, %c0_1, %c0_2] : memref<1x16x256xf32, #tpu.memory_space<vmem>>, vector<1x16x256xf32>
    %8 = vector.shape_cast %7 : vector<1x16x256xf32> to vector<16x256xf32>
    %cst = arith.constant dense<0.000000e+00> : vector<16xf32>
    %9 = vector.multi_reduction <add>, %8, %cst [1] : vector<16x256xf32> to vector<16xf32>
    %10 = vector.shape_cast %9 : vector<16xf32> to vector<16x1xf32>
    %cst_3 = arith.constant 2.560000e+02 : f32
    %11 = vector.broadcast %cst_3 : f32 to vector<16x1xf32>
    %12 = arith.divf %10, %11 : vector<16x1xf32>
    %13 = arith.mulf %8, %8 : vector<16x256xf32>
    %cst_4 = arith.constant dense<0.000000e+00> : vector<16xf32>
    %14 = vector.multi_reduction <add>, %13, %cst_4 [1] : vector<16x256xf32> to vector<16xf32>
    %15 = vector.shape_cast %14 : vector<16xf32> to vector<16x1xf32>
    %cst_5 = arith.constant 2.560000e+02 : f32
    %16 = vector.broadcast %cst_5 : f32 to vector<16x1xf32>
    %17 = arith.divf %15, %16 : vector<16x1xf32>
    %c0_6 = arith.constant 0 : index
    %c0_7 = arith.constant 0 : index
    %18 = vector.load %arg13[%c0_6, %c0_7] : memref<16x16xf32, #tpu.memory_space<vmem>>, vector<16x16xf32>
    %cst_8 = arith.constant dense<0.000000e+00> : vector<16x1xf32>
    %19 = tpu.matmul %18, %12, %cst_8 {dimension_numbers = #tpu.dot_dimension_numbers<[1], [0], [0], [1], [0, 0, 1, 1], [], []>} : vector<16x16xf32>, vector<16x1xf32>, vector<16x1xf32> -> vector<16x1xf32>
    %c0_9 = arith.constant 0 : index
    %c0_10 = arith.constant 0 : index
    %20 = vector.load %arg13[%c0_9, %c0_10] : memref<16x16xf32, #tpu.memory_space<vmem>>, vector<16x16xf32>
    %cst_11 = arith.constant dense<0.000000e+00> : vector<16x1xf32>
    %21 = tpu.matmul %20, %17, %cst_11 {dimension_numbers = #tpu.dot_dimension_numbers<[1], [0], [0], [1], [0, 0, 1, 1], [], []>} : vector<16x16xf32>, vector<16x1xf32>, vector<16x1xf32> -> vector<16x1xf32>
    %22 = arith.mulf %19, %19 : vector<16x1xf32>
    %23 = arith.subf %21, %22 : vector<16x1xf32>
    %cst_12 = arith.constant 9.99999974E-6 : f32
    %24 = vector.broadcast %cst_12 : f32 to vector<16x1xf32>
    %25 = arith.addf %23, %24 : vector<16x1xf32>
    %26 = math.rsqrt %25 : vector<16x1xf32>
    %c0_13 = arith.constant 0 : index
    %c0_14 = arith.constant 0 : index
    %27 = vector.load %arg9[%c0_13, %c0_14] : memref<16x1xf32, #tpu.memory_space<vmem>>, vector<16x1xf32>
    %28 = arith.mulf %26, %27 : vector<16x1xf32>
    %29 = vector.broadcast %19 : vector<16x1xf32> to vector<16x256xf32>
    %30 = arith.subf %8, %29 : vector<16x256xf32>
    %31 = vector.broadcast %28 : vector<16x1xf32> to vector<16x256xf32>
    %32 = arith.mulf %30, %31 : vector<16x256xf32>
    %c0_15 = arith.constant 0 : index
    %c0_16 = arith.constant 0 : index
    %33 = vector.load %arg10[%c0_15, %c0_16] : memref<16x1xf32, #tpu.memory_space<vmem>>, vector<16x1xf32>
    %34 = vector.broadcast %33 : vector<16x1xf32> to vector<16x256xf32>
    %35 = arith.addf %32, %34 : vector<16x256xf32>
    %cst_17 = arith.constant 0.000000e+00 : f32
    %36 = vector.broadcast %cst_17 : f32 to vector<16x256xf32>
    %37 = arith.subf %36, %35 : vector<16x256xf32>
    %38 = math.exp %37 : vector<16x256xf32>
    %cst_18 = arith.constant 1.000000e+00 : f32
    %39 = vector.broadcast %cst_18 : f32 to vector<16x256xf32>
    %40 = arith.addf %39, %38 : vector<16x256xf32>
    %41 = tpu.reciprocal %40 {approx = true} : vector<16x256xf32> -> vector<16x256xf32>
    %42 = arith.mulf %35, %41 : vector<16x256xf32>
    %cst_19 = arith.constant 0.000000e+00 : f32
    %43 = vector.broadcast %cst_19 : f32 to vector<16x17xf32>
    %c0_20 = arith.constant 0 : index
    %c0_21 = arith.constant 0 : index
    %44 = vector.load %arg16[%c0_20, %c0_21] : memref<16x290xf32, #tpu.memory_space<vmem>>, vector<16x17xf32>
    tpu.vector_store %arg16[%c0_20, %c0_21], %43 {strides = array<i32>} : memref<16x290xf32, #tpu.memory_space<vmem>>, vector<16x17xf32>,
    %cst_22 = arith.constant 0.000000e+00 : f32
    %45 = vector.broadcast %cst_22 : f32 to vector<16x17xf32>
    %c0_23 = arith.constant 0 : index
    %c273 = arith.constant 273 : index
    %46 = vector.load %arg16[%c0_23, %c273] : memref<16x290xf32, #tpu.memory_space<vmem>>, vector<16x17xf32>
    tpu.vector_store %arg16[%c0_23, %c273], %45 {strides = array<i32>} : memref<16x290xf32, #tpu.memory_space<vmem>>, vector<16x17xf32>,
    %c0_24 = arith.constant 0 : index
    %c17 = arith.constant 17 : index
    %47 = vector.load %arg16[%c0_24, %c17] : memref<16x290xf32, #tpu.memory_space<vmem>>, vector<16x256xf32>
    tpu.vector_store %arg16[%c0_24, %c17], %42 {strides = array<i32>} : memref<16x290xf32, #tpu.memory_space<vmem>>, vector<16x256xf32>,
    %c0_25 = arith.constant 0 : index
    %c0_26 = arith.constant 0 : index
    %48 = vector.load %arg16[%c0_25, %c0_26] : memref<16x290xf32, #tpu.memory_space<vmem>>, vector<16x256xf32>
    %cst_27 = arith.constant 0.000000e+00 : f32
    %49 = vector.shape_cast %4 : vector<1x256xi1> to vector<1x256xi1>
    %50 = vector.broadcast %49 : vector<1x256xi1> to vector<16x256xi1>
    %51 = vector.broadcast %cst_27 : f32 to vector<16x256xf32>
    %52 = arith.select %50, %48, %51 : vector<16x256xi1>, vector<16x256xf32>
    %c0_28 = arith.constant 0 : index
    %c1 = arith.constant 1 : index
    %53 = vector.load %arg16[%c0_28, %c1] : memref<16x290xf32, #tpu.memory_space<vmem>>, vector<16x256xf32>
    %c0_29 = arith.constant 0 : index
    %c2 = arith.constant 2 : index
    %54 = vector.load %arg16[%c0_29, %c2] : memref<16x290xf32, #tpu.memory_space<vmem>>, vector<16x256xf32>
    %cst_30 = arith.constant 0.000000e+00 : f32
    %55 = vector.shape_cast %6 : vector<1x256xi1> to vector<1x256xi1>
    %56 = vector.broadcast %55 : vector<1x256xi1> to vector<16x256xi1>
    %57 = vector.broadcast %cst_30 : f32 to vector<16x256xf32>
    %58 = arith.select %56, %54, %57 : vector<16x256xi1>, vector<16x256xf32>
    %c0_31 = arith.constant 0 : index
    %c16 = arith.constant 16 : index
    %59 = vector.load %arg16[%c0_31, %c16] : memref<16x290xf32, #tpu.memory_space<vmem>>, vector<16x256xf32>
    %cst_32 = arith.constant 0.000000e+00 : f32
    %60 = vector.shape_cast %4 : vector<1x256xi1> to vector<1x256xi1>
    %61 = vector.broadcast %60 : vector<1x256xi1> to vector<16x256xi1>
    %62 = vector.broadcast %cst_32 : f32 to vector<16x256xf32>
    %63 = arith.select %61, %59, %62 : vector<16x256xi1>, vector<16x256xf32>
    %c0_33 = arith.constant 0 : index
    %c17_34 = arith.constant 17 : index
    %64 = vector.load %arg16[%c0_33, %c17_34] : memref<16x290xf32, #tpu.memory_space<vmem>>, vector<16x256xf32>
    %c0_35 = arith.constant 0 : index
    %c18 = arith.constant 18 : index
    %65 = vector.load %arg16[%c0_35, %c18] : memref<16x290xf32, #tpu.memory_space<vmem>>, vector<16x256xf32>
    %cst_36 = arith.constant 0.000000e+00 : f32
    %66 = vector.shape_cast %6 : vector<1x256xi1> to vector<1x256xi1>
    %67 = vector.broadcast %66 : vector<1x256xi1> to vector<16x256xi1>
    %68 = vector.broadcast %cst_36 : f32 to vector<16x256xf32>
    %69 = arith.select %67, %65, %68 : vector<16x256xi1>, vector<16x256xf32>
    %c0_37 = arith.constant 0 : index
    %c32 = arith.constant 32 : index
    %70 = vector.load %arg16[%c0_37, %c32] : memref<16x290xf32, #tpu.memory_space<vmem>>, vector<16x256xf32>
    %cst_38 = arith.constant 0.000000e+00 : f32
    %71 = vector.shape_cast %4 : vector<1x256xi1> to vector<1x256xi1>
    %72 = vector.broadcast %71 : vector<1x256xi1> to vector<16x256xi1>
    %73 = vector.broadcast %cst_38 : f32 to vector<16x256xf32>
    %74 = arith.select %72, %70, %73 : vector<16x256xi1>, vector<16x256xf32>
    %c0_39 = arith.constant 0 : index
    %c33 = arith.constant 33 : index
    %75 = vector.load %arg16[%c0_39, %c33] : memref<16x290xf32, #tpu.memory_space<vmem>>, vector<16x256xf32>
    %c0_40 = arith.constant 0 : index
    %c34 = arith.constant 34 : index
    %76 = vector.load %arg16[%c0_40, %c34] : memref<16x290xf32, #tpu.memory_space<vmem>>, vector<16x256xf32>
    %cst_41 = arith.constant 0.000000e+00 : f32
    %77 = vector.shape_cast %6 : vector<1x256xi1> to vector<1x256xi1>
    %78 = vector.broadcast %77 : vector<1x256xi1> to vector<16x256xi1>
    %79 = vector.broadcast %cst_41 : f32 to vector<16x256xf32>
    %80 = arith.select %78, %76, %79 : vector<16x256xi1>, vector<16x256xf32>
    %81 = tpu.concatenate %52, %53, %58, %63, %64, %69, %74, %75, %80 in 0 : vector<16x256xf32>, vector<16x256xf32>, vector<16x256xf32>, vector<16x256xf32>, vector<16x256xf32>, vector<16x256xf32>, vector<16x256xf32>, vector<16x256xf32>, vector<16x256xf32> -> vector<144x256xf32>
    %82 = arith.truncf %81 : vector<144x256xf32> to vector<144x256xbf16>
    %c0_42 = arith.constant 0 : index
    %c0_43 = arith.constant 0 : index
    %83 = vector.load %arg3[%c0_42, %c0_43] : memref<32x144xbf16, #tpu.memory_space<vmem>>, vector<32x144xbf16>
    %cst_44 = arith.constant dense<0.000000e+00> : vector<32x256xf32>
    %84 = tpu.matmul %83, %82, %cst_44 {dimension_numbers = #tpu.dot_dimension_numbers<[1], [0], [0], [1], [0, 0, 1, 1], [], []>} : vector<32x144xbf16>, vector<144x256xbf16>, vector<32x256xf32> -> vector<32x256xf32>
    %c0_45 = arith.constant 0 : index
    %c0_46 = arith.constant 0 : index
    %85 = vector.load %arg4[%c0_45, %c0_46] : memref<32x1xf32, #tpu.memory_space<vmem>>, vector<32x1xf32>
    %86 = vector.broadcast %85 : vector<32x1xf32> to vector<32x256xf32>
    %87 = arith.addf %84, %86 : vector<32x256xf32>
    %c0_47 = arith.constant 0 : index
    %c0_48 = arith.constant 0 : index
    %c0_49 = arith.constant 0 : index
    %88 = vector.load %arg2[%c0_47, %c0_48, %c0_49] : memref<1x32x1xf32, #tpu.memory_space<vmem>>, vector<1x32x1xf32>
    %89 = vector.shape_cast %88 : vector<1x32x1xf32> to vector<32x1xf32>
    %90 = vector.broadcast %89 : vector<32x1xf32> to vector<32x256xf32>
    %91 = arith.addf %87, %90 : vector<32x256xf32>
    %cst_50 = arith.constant dense<0.000000e+00> : vector<32xf32>
    %92 = vector.multi_reduction <add>, %91, %cst_50 [1] : vector<32x256xf32> to vector<32xf32>
    %93 = vector.shape_cast %92 : vector<32xf32> to vector<32x1xf32>
    %cst_51 = arith.constant 2.560000e+02 : f32
    %94 = vector.broadcast %cst_51 : f32 to vector<32x1xf32>
    %95 = arith.divf %93, %94 : vector<32x1xf32>
    %96 = arith.mulf %91, %91 : vector<32x256xf32>
    %cst_52 = arith.constant dense<0.000000e+00> : vector<32xf32>
    %97 = vector.multi_reduction <add>, %96, %cst_52 [1] : vector<32x256xf32> to vector<32xf32>
    %98 = vector.shape_cast %97 : vector<32xf32> to vector<32x1xf32>
    %cst_53 = arith.constant 2.560000e+02 : f32
    %99 = vector.broadcast %cst_53 : f32 to vector<32x1xf32>
    %100 = arith.divf %98, %99 : vector<32x1xf32>
    %c0_54 = arith.constant 0 : index
    %c0_55 = arith.constant 0 : index
    %101 = vector.load %arg14[%c0_54, %c0_55] : memref<32x32xf32, #tpu.memory_space<vmem>>, vector<32x32xf32>
    %cst_56 = arith.constant dense<0.000000e+00> : vector<32x1xf32>
    %102 = tpu.matmul %101, %95, %cst_56 {dimension_numbers = #tpu.dot_dimension_numbers<[1], [0], [0], [1], [0, 0, 1, 1], [], []>} : vector<32x32xf32>, vector<32x1xf32>, vector<32x1xf32> -> vector<32x1xf32>
    %c0_57 = arith.constant 0 : index
    %c0_58 = arith.constant 0 : index
    %103 = vector.load %arg14[%c0_57, %c0_58] : memref<32x32xf32, #tpu.memory_space<vmem>>, vector<32x32xf32>
    %cst_59 = arith.constant dense<0.000000e+00> : vector<32x1xf32>
    %104 = tpu.matmul %103, %100, %cst_59 {dimension_numbers = #tpu.dot_dimension_numbers<[1], [0], [0], [1], [0, 0, 1, 1], [], []>} : vector<32x32xf32>, vector<32x1xf32>, vector<32x1xf32> -> vector<32x1xf32>
    %105 = arith.mulf %102, %102 : vector<32x1xf32>
    %106 = arith.subf %104, %105 : vector<32x1xf32>
    %cst_60 = arith.constant 9.99999974E-6 : f32
    %107 = vector.broadcast %cst_60 : f32 to vector<32x1xf32>
    %108 = arith.addf %106, %107 : vector<32x1xf32>
    %109 = math.rsqrt %108 : vector<32x1xf32>
    %c0_61 = arith.constant 0 : index
    %c0_62 = arith.constant 0 : index
    %110 = vector.load %arg11[%c0_61, %c0_62] : memref<32x1xf32, #tpu.memory_space<vmem>>, vector<32x1xf32>
    %111 = arith.mulf %109, %110 : vector<32x1xf32>
    %112 = vector.broadcast %102 : vector<32x1xf32> to vector<32x256xf32>
    %113 = arith.subf %91, %112 : vector<32x256xf32>
    %114 = vector.broadcast %111 : vector<32x1xf32> to vector<32x256xf32>
    %115 = arith.mulf %113, %114 : vector<32x256xf32>
    %c0_63 = arith.constant 0 : index
    %c0_64 = arith.constant 0 : index
    %116 = vector.load %arg12[%c0_63, %c0_64] : memref<32x1xf32, #tpu.memory_space<vmem>>, vector<32x1xf32>
    %117 = vector.broadcast %116 : vector<32x1xf32> to vector<32x256xf32>
    %118 = arith.addf %115, %117 : vector<32x256xf32>
    %cst_65 = arith.constant 0.000000e+00 : f32
    %119 = vector.broadcast %cst_65 : f32 to vector<32x256xf32>
    %120 = arith.subf %119, %118 : vector<32x256xf32>
    %121 = math.exp %120 : vector<32x256xf32>
    %cst_66 = arith.constant 1.000000e+00 : f32
    %122 = vector.broadcast %cst_66 : f32 to vector<32x256xf32>
    %123 = arith.addf %122, %121 : vector<32x256xf32>
    %124 = tpu.reciprocal %123 {approx = true} : vector<32x256xf32> -> vector<32x256xf32>
    %125 = arith.mulf %118, %124 : vector<32x256xf32>
    %cst_67 = arith.constant 0.000000e+00 : f32
    %126 = vector.broadcast %cst_67 : f32 to vector<32x17xf32>
    %c0_68 = arith.constant 0 : index
    %c0_69 = arith.constant 0 : index
    %127 = vector.load %arg17[%c0_68, %c0_69] : memref<32x290xf32, #tpu.memory_space<vmem>>, vector<32x17xf32>
    tpu.vector_store %arg17[%c0_68, %c0_69], %126 {strides = array<i32>} : memref<32x290xf32, #tpu.memory_space<vmem>>, vector<32x17xf32>,
    %cst_70 = arith.constant 0.000000e+00 : f32
    %128 = vector.broadcast %cst_70 : f32 to vector<32x17xf32>
    %c0_71 = arith.constant 0 : index
    %c273_72 = arith.constant 273 : index
    %129 = vector.load %arg17[%c0_71, %c273_72] : memref<32x290xf32, #tpu.memory_space<vmem>>, vector<32x17xf32>
    tpu.vector_store %arg17[%c0_71, %c273_72], %128 {strides = array<i32>} : memref<32x290xf32, #tpu.memory_space<vmem>>, vector<32x17xf32>,
    %c0_73 = arith.constant 0 : index
    %c17_74 = arith.constant 17 : index
    %130 = vector.load %arg17[%c0_73, %c17_74] : memref<32x290xf32, #tpu.memory_space<vmem>>, vector<32x256xf32>
    tpu.vector_store %arg17[%c0_73, %c17_74], %125 {strides = array<i32>} : memref<32x290xf32, #tpu.memory_space<vmem>>, vector<32x256xf32>,
    %c0_75 = arith.constant 0 : index
    %c0_76 = arith.constant 0 : index
    %131 = vector.load %arg17[%c0_75, %c0_76] : memref<32x290xf32, #tpu.memory_space<vmem>>, vector<32x256xf32>
    %cst_77 = arith.constant 0.000000e+00 : f32
    %132 = vector.shape_cast %4 : vector<1x256xi1> to vector<1x256xi1>
    %133 = vector.broadcast %132 : vector<1x256xi1> to vector<32x256xi1>
    %134 = vector.broadcast %cst_77 : f32 to vector<32x256xf32>
    %135 = arith.select %133, %131, %134 : vector<32x256xi1>, vector<32x256xf32>
    %c0_78 = arith.constant 0 : index
    %c1_79 = arith.constant 1 : index
    %136 = vector.load %arg17[%c0_78, %c1_79] : memref<32x290xf32, #tpu.memory_space<vmem>>, vector<32x256xf32>
    %c0_80 = arith.constant 0 : index
    %c2_81 = arith.constant 2 : index
    %137 = vector.load %arg17[%c0_80, %c2_81] : memref<32x290xf32, #tpu.memory_space<vmem>>, vector<32x256xf32>
    %cst_82 = arith.constant 0.000000e+00 : f32
    %138 = vector.shape_cast %6 : vector<1x256xi1> to vector<1x256xi1>
    %139 = vector.broadcast %138 : vector<1x256xi1> to vector<32x256xi1>
    %140 = vector.broadcast %cst_82 : f32 to vector<32x256xf32>
    %141 = arith.select %139, %137, %140 : vector<32x256xi1>, vector<32x256xf32>
    %c0_83 = arith.constant 0 : index
    %c16_84 = arith.constant 16 : index
    %142 = vector.load %arg17[%c0_83, %c16_84] : memref<32x290xf32, #tpu.memory_space<vmem>>, vector<32x256xf32>
    %cst_85 = arith.constant 0.000000e+00 : f32
    %143 = vector.shape_cast %4 : vector<1x256xi1> to vector<1x256xi1>
    %144 = vector.broadcast %143 : vector<1x256xi1> to vector<32x256xi1>
    %145 = vector.broadcast %cst_85 : f32 to vector<32x256xf32>
    %146 = arith.select %144, %142, %145 : vector<32x256xi1>, vector<32x256xf32>
    %c0_86 = arith.constant 0 : index
    %c17_87 = arith.constant 17 : index
    %147 = vector.load %arg17[%c0_86, %c17_87] : memref<32x290xf32, #tpu.memory_space<vmem>>, vector<32x256xf32>
    %c0_88 = arith.constant 0 : index
    %c18_89 = arith.constant 18 : index
    %148 = vector.load %arg17[%c0_88, %c18_89] : memref<32x290xf32, #tpu.memory_space<vmem>>, vector<32x256xf32>
    %cst_90 = arith.constant 0.000000e+00 : f32
    %149 = vector.shape_cast %6 : vector<1x256xi1> to vector<1x256xi1>
    %150 = vector.broadcast %149 : vector<1x256xi1> to vector<32x256xi1>
    %151 = vector.broadcast %cst_90 : f32 to vector<32x256xf32>
    %152 = arith.select %150, %148, %151 : vector<32x256xi1>, vector<32x256xf32>
    %c0_91 = arith.constant 0 : index
    %c32_92 = arith.constant 32 : index
    %153 = vector.load %arg17[%c0_91, %c32_92] : memref<32x290xf32, #tpu.memory_space<vmem>>, vector<32x256xf32>
    %cst_93 = arith.constant 0.000000e+00 : f32
    %154 = vector.shape_cast %4 : vector<1x256xi1> to vector<1x256xi1>
    %155 = vector.broadcast %154 : vector<1x256xi1> to vector<32x256xi1>
    %156 = vector.broadcast %cst_93 : f32 to vector<32x256xf32>
    %157 = arith.select %155, %153, %156 : vector<32x256xi1>, vector<32x256xf32>
    %c0_94 = arith.constant 0 : index
    %c33_95 = arith.constant 33 : index
    %158 = vector.load %arg17[%c0_94, %c33_95] : memref<32x290xf32, #tpu.memory_space<vmem>>, vector<32x256xf32>
    %c0_96 = arith.constant 0 : index
    %c34_97 = arith.constant 34 : index
    %159 = vector.load %arg17[%c0_96, %c34_97] : memref<32x290xf32, #tpu.memory_space<vmem>>, vector<32x256xf32>
    %cst_98 = arith.constant 0.000000e+00 : f32
    %160 = vector.shape_cast %6 : vector<1x256xi1> to vector<1x256xi1>
    %161 = vector.broadcast %160 : vector<1x256xi1> to vector<32x256xi1>
    %162 = vector.broadcast %cst_98 : f32 to vector<32x256xf32>
    %163 = arith.select %161, %159, %162 : vector<32x256xi1>, vector<32x256xf32>
    %164 = tpu.concatenate %135, %136, %141, %146, %147, %152, %157, %158, %163 in 0 : vector<32x256xf32>, vector<32x256xf32>, vector<32x256xf32>, vector<32x256xf32>, vector<32x256xf32>, vector<32x256xf32>, vector<32x256xf32>, vector<32x256xf32>, vector<32x256xf32> -> vector<288x256xf32>
    %165 = arith.truncf %164 : vector<288x256xf32> to vector<288x256xbf16>
    %c0_99 = arith.constant 0 : index
    %c0_100 = arith.constant 0 : index
    %166 = vector.load %arg5[%c0_99, %c0_100] : memref<32x288xbf16, #tpu.memory_space<vmem>>, vector<32x288xbf16>
    %cst_101 = arith.constant dense<0.000000e+00> : vector<32x256xf32>
    %167 = tpu.matmul %166, %165, %cst_101 {dimension_numbers = #tpu.dot_dimension_numbers<[1], [0], [0], [1], [0, 0, 1, 1], [], []>} : vector<32x288xbf16>, vector<288x256xbf16>, vector<32x256xf32> -> vector<32x256xf32>
    %c0_102 = arith.constant 0 : index
    %c0_103 = arith.constant 0 : index
    %168 = vector.load %arg6[%c0_102, %c0_103] : memref<32x1xf32, #tpu.memory_space<vmem>>, vector<32x1xf32>
    %169 = vector.broadcast %168 : vector<32x1xf32> to vector<32x256xf32>
    %170 = arith.addf %167, %169 : vector<32x256xf32>
    %c0_104 = arith.constant 0 : index
    %c0_105 = arith.constant 0 : index
    %171 = vector.load %arg7[%c0_104, %c0_105] : memref<32x16xbf16, #tpu.memory_space<vmem>>, vector<32x16xbf16>
    %172 = arith.truncf %8 : vector<16x256xf32> to vector<16x256xbf16>
    %cst_106 = arith.constant dense<0.000000e+00> : vector<32x256xf32>
    %173 = tpu.matmul %171, %172, %cst_106 {dimension_numbers = #tpu.dot_dimension_numbers<[1], [0], [0], [1], [0, 0, 1, 1], [], []>} : vector<32x16xbf16>, vector<16x256xbf16>, vector<32x256xf32> -> vector<32x256xf32>
    %c0_107 = arith.constant 0 : index
    %c0_108 = arith.constant 0 : index
    %174 = vector.load %arg8[%c0_107, %c0_108] : memref<32x1xf32, #tpu.memory_space<vmem>>, vector<32x1xf32>
    %175 = vector.broadcast %174 : vector<32x1xf32> to vector<32x256xf32>
    %176 = arith.addf %173, %175 : vector<32x256xf32>
    %177 = arith.addf %170, %176 : vector<32x256xf32>
    %178 = vector.shape_cast %177 : vector<32x256xf32> to vector<1x32x256xf32>
    %c0_109 = arith.constant 0 : index
    %c0_110 = arith.constant 0 : index
    %c0_111 = arith.constant 0 : index
    %179 = vector.load %arg15[%c0_109, %c0_110, %c0_111] : memref<1x32x256xf32, #tpu.memory_space<vmem>>, vector<1x32x256xf32>
    tpu.vector_store %arg15[%c0_109, %c0_110, %c0_111], %178 {strides = array<i32>} : memref<1x32x256xf32, #tpu.memory_space<vmem>>, vector<1x32x256xf32>,
    return
  }
  func.func @transform_0(%arg0: i32) -> (i32, i32, i32) {
    %c0_i32 = arith.constant 0 : i32
    %c0_i32_0 = arith.constant 0 : i32
    %c0_i32_1 = arith.constant 0 : i32
    return %arg0, %c0_i32, %c0_i32_0 : i32, i32, i32
  }
  func.func @transform_1(%arg0: i32) -> (i32, i32, i32) {
    %c0_i32 = arith.constant 0 : i32
    %c0_i32_0 = arith.constant 0 : i32
    %c0_i32_1 = arith.constant 0 : i32
    return %arg0, %c0_i32, %c0_i32_0 : i32, i32, i32
  }
  func.func @transform_2(%arg0: i32) -> (i32, i32) {
    %c0_i32 = arith.constant 0 : i32
    %c0_i32_0 = arith.constant 0 : i32
    %c0_i32_1 = arith.constant 0 : i32
    return %c0_i32, %c0_i32_0 : i32, i32
  }
  func.func @transform_3(%arg0: i32) -> (i32, i32) {
    %c0_i32 = arith.constant 0 : i32
    %c0_i32_0 = arith.constant 0 : i32
    %c0_i32_1 = arith.constant 0 : i32
    return %c0_i32, %c0_i32_0 : i32, i32
  }
  func.func @transform_4(%arg0: i32) -> (i32, i32) {
    %c0_i32 = arith.constant 0 : i32
    %c0_i32_0 = arith.constant 0 : i32
    %c0_i32_1 = arith.constant 0 : i32
    return %c0_i32, %c0_i32_0 : i32, i32
  }
  func.func @transform_5(%arg0: i32) -> (i32, i32) {
    %c0_i32 = arith.constant 0 : i32
    %c0_i32_0 = arith.constant 0 : i32
    %c0_i32_1 = arith.constant 0 : i32
    return %c0_i32, %c0_i32_0 : i32, i32
  }
  func.func @transform_6(%arg0: i32) -> (i32, i32) {
    %c0_i32 = arith.constant 0 : i32
    %c0_i32_0 = arith.constant 0 : i32
    %c0_i32_1 = arith.constant 0 : i32
    return %c0_i32, %c0_i32_0 : i32, i32
  }
  func.func @transform_7(%arg0: i32) -> (i32, i32) {
    %c0_i32 = arith.constant 0 : i32
    %c0_i32_0 = arith.constant 0 : i32
    %c0_i32_1 = arith.constant 0 : i32
    return %c0_i32, %c0_i32_0 : i32, i32
  }
  func.func @transform_8(%arg0: i32) -> (i32, i32) {
    %c0_i32 = arith.constant 0 : i32
    %c0_i32_0 = arith.constant 0 : i32
    %c0_i32_1 = arith.constant 0 : i32
    return %c0_i32, %c0_i32_0 : i32, i32
  }
  func.func @transform_9(%arg0: i32) -> (i32, i32) {
    %c0_i32 = arith.constant 0 : i32
    %c0_i32_0 = arith.constant 0 : i32
    %c0_i32_1 = arith.constant 0 : i32
    return %c0_i32, %c0_i32_0 : i32, i32
  }
  func.func @transform_10(%arg0: i32) -> (i32, i32) {
    %c0_i32 = arith.constant 0 : i32
    %c0_i32_0 = arith.constant 0 : i32
    %c0_i32_1 = arith.constant 0 : i32
    return %c0_i32, %c0_i32_0 : i32, i32
  }
  func.func @transform_11(%arg0: i32) -> (i32, i32) {
    %c0_i32 = arith.constant 0 : i32
    %c0_i32_0 = arith.constant 0 : i32
    %c0_i32_1 = arith.constant 0 : i32
    return %c0_i32, %c0_i32_0 : i32, i32
  }
  func.func @transform_12(%arg0: i32) -> (i32, i32) {
    %c0_i32 = arith.constant 0 : i32
    %c0_i32_0 = arith.constant 0 : i32
    %c0_i32_1 = arith.constant 0 : i32
    return %c0_i32, %c0_i32_0 : i32, i32
  }
  func.func @transform_13(%arg0: i32) -> (i32, i32) {
    %c0_i32 = arith.constant 0 : i32
    %c0_i32_0 = arith.constant 0 : i32
    %c0_i32_1 = arith.constant 0 : i32
    return %c0_i32, %c0_i32_0 : i32, i32
  }
  func.func @transform_14(%arg0: i32) -> (i32, i32, i32) {
    %c0_i32 = arith.constant 0 : i32
    %c0_i32_0 = arith.constant 0 : i32
    %c0_i32_1 = arith.constant 0 : i32
    return %arg0, %c0_i32, %c0_i32_0 : i32, i32, i32
  }
}

</mosaic_0001>

<bundles_post_ra>
// kernel: tpu_custom_call.1
= control target key start
LH: loop header
LB: loop body
LE: loop exit
PB: predicated region body
PF: predicated region fallthrough
CT: control target
= control target key end

     0   :  { %s4179_s0 = inlined_call_operand.vmem [shape: f32[2,16,256], index: 0, kind: input, shape index: {}]   ;;  %s4180_s1 = inlined_call_operand.vmem [shape: f32[2,32,1], index: 1, kind: input, shape index: {}]   ;;  %s4181_s2 = inlined_call_operand.vmem [shape: bf16[32,144], index: 2, kind: input, shape index: {}]   ;;  %s4182_s3 = inlined_call_operand.vmem [shape: f32[32,1], index: 3, kind: input, shape index: {}]   ;;  %s4183_s4 = inlined_call_operand.vmem [shape: bf16[32,288], index: 4, kind: input, shape index: {}]   ;;  %s4184_s5 = inlined_call_operand.vmem [shape: f32[32,1], index: 5, kind: input, shape index: {}]   ;;  %s4185_s6 = inlined_call_operand.vmem [shape: bf16[32,16], index: 6, kind: input, shape index: {}]   ;;  %s4186_s7 = inlined_call_operand.vmem [shape: f32[32,1], index: 7, kind: input, shape index: {}]   ;;  %s4187_s8 = inlined_call_operand.vmem [shape: f32[16,1], index: 8, kind: input, shape index: {}]   ;;  %s4188_s9 = inlined_call_operand.vmem [shape: f32[16,1], index: 9, kind: input, shape index: {}]   ;;  %s4189_s10 = inlined_call_operand.vmem [shape: f32[32,1], index: 10, kind: input, shape index: {}]   ;;  %s4190_s11 = inlined_call_operand.vmem [shape: f32[32,1], index: 11, kind: input, shape index: {}]   ;;  %s4191_s12 = inlined_call_operand.vmem [shape: f32[16,16], index: 12, kind: input, shape index: {}]   ;;  %s4192_s13 = inlined_call_operand.vmem [shape: f32[32,32], index: 13, kind: input, shape index: {}]   ;;  %s4193_s14 = inlined_call_operand.hbm [shape: f32[2,32,256], index: 14, kind: output, shape index: {}]  }
   0x1   :  { %4212 = sst [smem:[#allocation9_spill]] %s4179_s0 }
   0x2   :  { %4213 = sst [smem:[#allocation10_spill]] %s4187_s8 }
   0x3   :  { %4214 = sst [smem:[#allocation11_spill]] %s4188_s9 }
   0x4   :  { %4215 = sst [smem:[#allocation12_spill]] %s4191_s12 }
   0x5   :  { %19 = vsyncpa [#allocation5], 0 }
   0x6   :  { %21 = vsyncpa [#allocation5 + $0x1], 0  ;;  %s3336_s29 = smov 0   ;;  %s3338_s30 = smov 0  }
   0x7   :  { %s3340_s15 = smov 0   ;;  %s3342_s16 = smov 0  }
   0x8 LB: > { %4216 = sst [smem:[#allocation7_spill]] %s3241_s15  ;;  %s3357_s17 = sadd.s32 4294967295, %s3245_s16   ;;  %s3245_s16 = sphi %s3342_s16, %s4247_s16   ;;  %s3241_s15 = sphi %s3340_s15, %s4244_s15   ;;  %s3237_s30 = sphi %s3338_s30, %s4246_s30   ;;  %s3233_s29 = sphi %s3336_s29, %s4245_s29  }
   0x9   : > { %s2412_s18 = sadd.s32 4294967294, %s3245_s16   ;;  %s3361_s19 = sadd.s32 1, %s3245_s16  }
   0xa   : > { %s338_s20 = sadd.s32 1, %s3241_s15  ;;  %s335_s21 = ssub.s32 %s3245_s16, %s3361_s19 }
   0xb   : > { %p348_p0 = scmp.ne.s32.totalorder %s3241_s15, %s3237_s30  ;;  %p336_p1 = scmp.eq.s32.totalorder %s335_s21, 0 }
   0xc   : > { %p349_p2 = scmp.eq.s32.totalorder %s3357_s17, 1  ;;  %p354_p3 = scmp.ne.s32.totalorder %s3237_s30, %s3233_s29 }
   0xd   : > { %p355_p4 = scmp.eq.s32.totalorder %s2412_s18, 1  ;;  %p2415_p7 = scmp.ge.s32.totalorder %s3245_s16, 1 }
   0xe   : > { %s3372_s22 = scalar_select %p336_p1, %s3241_s15, %s338_s20  }
   0xf   : > { %p3374_p5 = por %p349_p2, %p348_p0  ;;  %p3378_p6 = por %p355_p4, %p354_p3 }
  0x10   : > { %4217 = sst [smem:[#allocation8_spill]] %s3372_s22  ;;  %p425_p8 = scmp.lt.s32.totalorder %s3245_s16, 3 }
  0x12   : > { %p426_p9 = pnand %p2415_p7, %p425_p8 }
  0x13   : > { %p476_p10 = scmp.lt.s32.totalorder (!%p426_p9), %s3357_s17, 1  ;;  %s4220_s0 = sld [smem:[#allocation9_spill]] (!%p426_p9)  ;;  %vm523_vm0 = vcmask (!%p426_p9), 130048   ;;  %v3247_v13 = vmov (!%p426_p9), 0   ;;  %vm760_vm1 = vcmask (!%p426_p9), 138240   ;;  %v3248_v43 = vmov (!%p426_p9), 0.0  }
  0x14   : > { %429 = sbr.rel (%p426_p9) target bundleno = 2255 (0x8cf), region = 76  ;;  %s4221_s12 = sld [smem:[#allocation12_spill]] (!%p426_p9)  ;;  %2742 = vset.pattern.permute.xlu1 (!%p426_p9), %v3247_v13  ;;  %2741 = vset.pattern.permute.xlu0 (!%p426_p9), %v3247_v13  ;;  %761 = vst.msk [vmem:[#allocation2] sm:$0xff] (!%p426_p9), %vm760_vm1, %v3248_v43  ;;  %762 = vst.msk [vmem:[#allocation2 + $0x18] sm:$0xff] (!%p426_p9), %vm760_vm1, %v3248_v43  ;;  %vm763_vm2 = vcmask (!%p426_p9), 277640   ;;  %vm786_vm3 = vcmask (!%p426_p9), 1047688  }
  0x15   : > { %s4222_s9 = sld [smem:[#allocation11_spill]] (!%p426_p9)  ;;  %s4223_s8 = sld [smem:[#allocation10_spill]] (!%p426_p9)  ;;  %1547 = vst.msk [vmem:[#allocation3] sm:$0xff] (!%p426_p9), %vm760_vm1, %v3248_v43  ;;  %1548 = vst.msk [vmem:[#allocation3 + $0x18] sm:$0xff] (!%p426_p9), %vm760_vm1, %v3248_v43  ;;  %vm954_vm8 = vcmask (!%p426_p9), 1039360   ;;  %vm829_vm9 = vcmask (!%p426_p9), 1031168  }
  0x16   : > { %1549 = vst.msk [vmem:[#allocation3 + $0x30] sm:$0xff] (!%p426_p9), %vm760_vm1, %v3248_v43  ;;  %1550 = vst.msk [vmem:[#allocation3 + $0x48] sm:$0xff] (!%p426_p9), %vm760_vm1, %v3248_v43  ;;  %s4197_s27 = smov (!%p426_p9), 126   ;;  %s4203_s28 = smov (!%p426_p9), 112   ;;  %vm854_vm13 = vcmask (!%p426_p9), 916480   ;;  %vm975_vm15 = vcmask (!%p426_p9), 908288  }
  0x17   : > { %765 = vst.msk [vmem:[#allocation2 + $0x28] sm:$0xff] (!%p426_p9), %vm763_vm2, %v3248_v43  ;;  %764 = vst.msk [vmem:[#allocation2 + $0x10] sm:$0xff] (!%p426_p9), %vm763_vm2, %v3248_v43  ;;  %s4201_s20 = smov (!%p426_p9), 111   ;;  %s4207_s21 = smov (!%p426_p9), 110  }
  0x18   : > { %1551 = vst.msk [vmem:[#allocation3 + $0x10] sm:$0xff] (!%p426_p9), %vm763_vm2, %v3248_v43  ;;  %1552 = vst.msk [vmem:[#allocation3 + $0x28] sm:$0xff] (!%p426_p9), %vm763_vm2, %v3248_v43  ;;  %s4241_s15 = smov (!%p426_p9), 96  }
  0x19   : > { %1553 = vst.msk [vmem:[#allocation3 + $0x40] sm:$0xff] (!%p426_p9), %vm763_vm2, %v3248_v43  ;;  %1554 = vst.msk [vmem:[#allocation3 + $0x58] sm:$0xff] (!%p426_p9), %vm763_vm2, %v3248_v43  ;;  %vm879_vm2 = vcmask (!%p426_p9), 900096  }
  0x1a   : > { %v521_v12 = vld [vmem:[%s4221_s12] sm:$0xff] (!%p426_p9)  ;;  %v522_v24 = vld [vmem:[%s4221_s12 + $0x8] sm:$0xff] (!%p426_p9)  ;;  %s4240_s12 = smov (!%p426_p9), 110  }
  0x1b   : > { %s3386_s25 = scalar_select %p476_p10, %s3357_s17, 1  ;;  %2595 = vmatprep.mubr.msk.f32.mxu0 %vm523_vm0, %v521_v12  ;;  %v720_v27 = vld [vmem:[%s4222_s9] sm:$0xff]  ;;  %v689_v36 = vld [vmem:[%s4223_s8 + $0x8] sm:$0xff] }
  0x1c   : > { %v688_v40 = vld [vmem:[%s4223_s8] sm:$0xff]  ;;  %v721_v42 = vld [vmem:[%s4222_s9 + $0x8] sm:$0xff]  ;;  %s4239_s9 = smov 111  }
  0x1d   : > { %s4194_s26 = sshll.u32 %s3386_s25, 5  ;;  %s4228_s8 = sshll.u32 %s3386_s25, 5 }
  0x1e   : > { %s3394_s18 = scalar_lea.vmem %s4220_s0, %s4194_s26  ;;  %s4195_s0 = smov 17  }
  0x1f   : > { %v3397_v0 = vld [vmem:[%s3394_s18] sm:$0xff]  ;;  %v3400_v1 = vld [vmem:[%s3394_s18 + $0x8] sm:$0xff]  ;;  %v3403_v2 = vld [vmem:[%s3394_s18 + $0x10] sm:$0xff]  ;;  %s4199_s26 = smov 127   ;;  %s485_s22 = scalar_lea.vmem %s4180_s1, %s4228_s8 }
  0x20   : > { %v500_v3 = vadd.f32 %v3400_v1, %v3397_v0  ;;  %v509_v4 = vmul.f32 %v3397_v0, %v3397_v0  ;;  %v510_v5 = vmul.f32 %v3400_v1, %v3400_v1  ;;  %v3412_v6 = vld [vmem:[%s3394_s18 + $0x18] sm:$0xff]  ;;  %v511_v7 = vmul.f32 %v3403_v2, %v3403_v2  ;;  %s4236_s25 = smov 127   ;;  %s4238_s8 = smov 112  }
  0x21   : > { %v512_v8 = vmul.f32 %v3412_v6, %v3412_v6  ;;  %v503_v10 = vadd.f32 %v3412_v6, %v3403_v2 }
  0x22   : > { %501 = vadd.xlane.f32.xlu0 %v500_v3  ;;  %v513_v9 = vadd.f32 %v510_v5, %v509_v4 }
  0x23   : > { %v516_v11 = vadd.f32 %v512_v8, %v511_v7 }
  0x24   : > { %514 = vadd.xlane.f32.xlu1 %v513_v9 }
  0x26   : > { %504 = vadd.xlane.f32.xlu0 %v503_v10 }
  0x28   : > { %517 = vadd.xlane.f32.xlu1 %v516_v11 }
  0xaf   : > { %v502_v14 = vpop.xlane.xlu0 %501 }
  0xb0   : > { %v507_v17 = vmul.f32 0.00390625, %v502_v14 }
  0xb1   : > { %v515_v15 = vpop.xlane.xlu1 %514 }
  0xb2   : > { %v519_v20 = vmul.f32 0.00390625, %v515_v15 }
  0xb3   : > { %v505_v16 = vpop.xlane.xlu0 %504 }
  0xb4   : > { %v508_v18 = vmul.f32 0.00390625, %v505_v16 }
  0xb5   : > { %v518_v19 = vpop.xlane.xlu1 %517 }
  0xb6   : > { %v520_v21 = vmul.f32 0.00390625, %v518_v19  ;;  %v2633_v22 = vpack.c.bf16 %v508_v18, %v507_v17 }
  0xb8   : > { %v2637_v23 = vpack.c.bf16 %v520_v21, %v519_v20  ;;  %2634 = vmatprep.subr.bf16.mxu0 %v2633_v22 }
  0xb9   : > { %2636 = vmatpush3.bf16.msra.mxu0 %v2633_v22 }
  0xba   : > { %2638 = vmatprep.subr.bf16.mxu0 %v2637_v23 }
  0xbc   : > { %2596 = vmatmul.mubr.msk.f32.vlgmr.msra.gmra.mrb[0].mxu0 %vm523_vm0, %v522_v24 }
  0xbd   : > { %2640 = vmatpush3.bf16.msra.mxu0 %v2637_v23  ;;  %2602 = vmatprep.mubr.msk.f32.mxu0 %vm523_vm0, %v521_v12  ;;  %v487_v23 = vlaneseq }
  0xc0   : > { %2603 = vmatmul.mubr.msk.f32.vlgmr.msra.gmra.mrb[2].mxu0 %vm523_vm0, %v522_v24  ;;  %v3458_v24 = vand.u32 127, %v487_v23 }
 0x18f   : > { %v2597_v25 = vpop.f32.mrb[0].mxu0 }
 0x190   : > { %699 = vperm.xlu1 %2742, %v2597_v25   ;;  %v596_v26 = vpop.f32.mrb[1].mxu0  ;;  %v681_v28 = vmul.f32 %v2597_v25, %v2597_v25  ;;  %v3461_v25 = vadd.s32 128, %v3458_v24 }
 0x191   : > { %694 = vperm.xlu0 %2741, %v596_v26   ;;  %v680_v29 = vmul.f32 %v596_v26, %v596_v26 }
 0x193   : > { %v2604_v30 = vpop.f32.mrb[2].mxu0 }
 0x194   : > { %v683_v31 = vsub.f32 %v2604_v30, %v681_v28  ;;  %v671_v32 = vpop.f32.mrb[3].mxu0  ;;  %724 = vperm.xlu1 %2742, %v720_v27   ;;  %v491_v27 = vand.u32 15, %v3461_v25 }
 0x195   : > { %v682_v33 = vsub.f32 %v671_v32, %v680_v29 }
 0x196   : > { %v685_v34 = vadd.f32 1e-05, %v683_v31  ;;  %vm493_vm4 = vcmp.ne.s32.totalorder %v491_v27, 0  ;;  %vm495_vm10 = vcmp.ne.s32.totalorder %v491_v27, 15 }
 0x197   : > { %v684_v35 = vadd.f32 1e-05, %v682_v33  ;;  %vm3472_vm5 = vmpackc.low %vm493_vm4, %vm493_vm4  ;;  %vm904_vm4 = vcmask 785408  }
 0x198   : > { %3119 = vrsqrt.f32 %v685_v34  ;;  %v490_v34 = vand.u32 15, %v3458_v24  ;;  %vm3548_vm11 = vmpackc.low %vm495_vm10, %vm495_vm10  ;;  %vm929_vm10 = vcmask 769024  }
 0x199   : > { %3121 = vrsqrt.f32 %v684_v35 }
 0x19a   : > { %vm492_vm6 = vcmp.ne.s32.totalorder %v490_v34, 0  ;;  %vm3554_vm12 = vcmp.ne.s32.totalorder %v490_v34, 15 }
 0x19b   : > { %vm3482_vm7 = vmpackc.low %vm492_vm6, %vm492_vm6  ;;  %vm996_vm6 = vcmask 777216  }
 0x19c   : > { %vm3566_vm14 = vmpackc.low %vm3554_vm12, %vm3554_vm12  ;;  %vm1204_vm12 = vcmask 261120  }
 0x1a2   : > { %v3120_v37 = vpop.eup %3119 }
 0x1a3   : > { %v691_v38 = vmul.f32 %v3120_v37, %v689_v36  ;;  %v3122_v39 = vpop.eup %3121 }
 0x1a4   : > { %v690_v41 = vmul.f32 %v3122_v39, %v688_v40 }
 0x1a5   : > { %713 = vperm.xlu1 %2742, %v691_v38  }
 0x1a9   : > { %708 = vperm.xlu1 %2742, %v690_v41  }
 0x1ad   : > { %729 = vperm.xlu1 %2742, %v721_v42  }
 0x20f   : > { %v700_v44 = vpop.permute.xlu1 %699 }
 0x210   : > { %v695_v46 = vpop.permute.xlu0 %694  ;;  %v704_v51 = vsub.f32 %v3403_v2, %v700_v44  ;;  %v705_v52 = vsub.f32 %v3412_v6, %v700_v44 }
 0x211   : > { %v702_v48 = vsub.f32 %v3397_v0, %v695_v46  ;;  %v703_v49 = vsub.f32 %v3400_v1, %v695_v46  ;;  %v1028_v46 = vld [vmem:[%s4182_s3 + $0x8] sm:$0xff] }
 0x213   : > { %v725_v45 = vpop.permute.xlu1 %724 }
 0x224   : > { %v714_v47 = vpop.permute.xlu1 %713 }
 0x225   : > { %v718_v55 = vmul.f32 %v714_v47, %v704_v51  ;;  %v719_v56 = vmul.f32 %v714_v47, %v705_v52  ;;  %v1027_v47 = vld [vmem:[%s4182_s3] sm:$0xff]  ;;  %v1029_v51 = vld [vmem:[%s4182_s3 + $0x10] sm:$0xff]  ;;  %v1131_v52 = vld [vmem:[%s485_s22 + $0x18] sm:$0xff] }
 0x228   : > { %v709_v50 = vpop.permute.xlu1 %708 }
 0x229   : > { %v716_v53 = vmul.f32 %v709_v50, %v702_v48  ;;  %v717_v54 = vmul.f32 %v709_v50, %v703_v49  ;;  %v1129_v48 = vld [vmem:[%s485_s22 + $0x8] sm:$0xff]  ;;  %v1128_v49 = vld [vmem:[%s485_s22] sm:$0xff]  ;;  %v1030_v50 = vld [vmem:[%s4182_s3 + $0x18] sm:$0xff] }
 0x22b   : > { %v732_v57 = vadd.f32 %v725_v45, %v716_v53  ;;  %v733_v58 = vadd.f32 %v725_v45, %v717_v54  ;;  %v3103_v45 = vld [vmem:[%s4181_s2 + $0x4] ss:$8 sps:$4 sm:$0xff]   ;;  %v1130_v53 = vld [vmem:[%s485_s22 + $0x10] sm:$0xff]  ;;  %s4242_s22 = smov 95  }
 0x22c   : > { %v730_v59 = vpop.permute.xlu1 %729  ;;  %2465 = vmatprep.mubr.msk.bf16.mxu0 %vm523_vm0, %v3103_v45 }
 0x22d   : > { %v736_v60 = vsub.f32 0.0, %v732_v57  ;;  %v737_v61 = vsub.f32 0.0, %v733_v58  ;;  %v734_v62 = vadd.f32 %v730_v59, %v718_v55  ;;  %v735_v63 = vadd.f32 %v730_v59, %v719_v56 }
 0x22f   : > { %v740_v3 = vmul.f32 1.442695, %v736_v60  ;;  %v742_v0 = vmul.f32 1.442695, %v737_v61  ;;  %v738_v4 = vsub.f32 0.0, %v734_v62  ;;  %v739_v1 = vsub.f32 0.0, %v735_v63 }
 0x231   : > { %3123 = vpow2.f32 %v740_v3  ;;  %v744_v5 = vmul.f32 1.442695, %v738_v4  ;;  %v746_v2 = vmul.f32 1.442695, %v739_v1 }
 0x232   : > { %3125 = vpow2.f32 %v742_v0 }
 0x233   : > { %3127 = vpow2.f32 %v744_v5 }
 0x234   : > { %3129 = vpow2.f32 %v746_v2 }
 0x23b   : > { %v3124_v6 = vpop.eup %3123 }
 0x23c   : > { %v3126_v7 = vpop.eup %3125  ;;  %v748_v8 = vadd.f32 1.0, %v3124_v6 }
 0x23d   : > { %v3128_v9 = vpop.eup %3127  ;;  %v749_v10 = vadd.f32 1.0, %v3126_v7 }
 0x23e   : > { %v3130_v11 = vpop.eup %3129  ;;  %3131 = vrcp.f32 %v748_v8  ;;  %v750_v14 = vadd.f32 1.0, %v3128_v9 }
 0x23f   : > { %v751_v12 = vadd.f32 1.0, %v3130_v11  ;;  %3133 = vrcp.f32 %v749_v10 }
 0x241   : > { %3135 = vrcp.f32 %v751_v12 }
 0x242   : > { %3137 = vrcp.f32 %v750_v14 }
 0x248   : > { %v3132_v15 = vpop.eup %3131 }
 0x249   : > { %v756_v16 = vmul.f32 %v3132_v15, %v732_v57  ;;  %v3134_v17 = vpop.eup %3133 }
 0x24a   : > { %v757_v20 = vmul.f32 %v3134_v17, %v733_v58 }
 0x24b   : > { %v3136_v18 = vpop.eup %3135  ;;  %770 = vrot.lane.b32.xlu1 %v756_v16, %s4195_s0 }
 0x24c   : > { %v759_v19 = vmul.f32 %v3136_v18, %v735_v63  ;;  %v3138_v21 = vpop.eup %3137 }
 0x24d   : > { %v758_v22 = vmul.f32 %v3138_v21, %v734_v62 }
 0x24e   : > { %776 = vrot.lane.b32.xlu0 %v759_v19, %s4195_s0 }
 0x24f   : > { %772 = vrot.lane.b32.xlu1 %v757_v20, %s4195_s0 }
 0x253   : > { %774 = vrot.lane.b32.xlu1 %v758_v22, %s4195_s0  ;;  %s4205_s0 = smov 96  }
 0x2bd   : > { %v771_v26 = vpop.permute.xlu1 %770 }
 0x2be   : > { %787 = vst.msk [vmem:[#allocation2] sm:$0xff] %vm786_vm3, %v771_v26 }
 0x2c0   : > { %v777_v28 = vpop.permute.xlu0 %776 }
 0x2c1   : > { %792 = vst.msk [vmem:[#allocation2 + $0x28] sm:$0xff] %vm760_vm1, %v777_v28  ;;  %v773_v29 = vpop.permute.xlu1 %772 }
 0x2c2   : > { %v778_v30 = vsel %vm760_vm1, %v771_v26, %v773_v29  ;;  %789 = vst.msk [vmem:[#allocation2 + $0x10] sm:$0xff] %vm760_vm1, %v773_v29 }
 0x2c5   : > { %v775_v31 = vpop.permute.xlu1 %774  ;;  %v793_v38 = vld [vmem:[#allocation2] sm:$0xff] }
 0x2c6   : > { %v779_v32 = vsel %vm760_vm1, %v775_v31, %v777_v28  ;;  %790 = vst.msk [vmem:[#allocation2 + $0x18] sm:$0xff] %vm786_vm3, %v775_v31 }
 0x2c7   : > { %v2430_v35 = vpack.c.bf16 %v779_v32, %v778_v30 }
 0x2c8   : > { %v806_v36 = vld [vmem:[#allocation2 + $0x28] sm:$0xff] }
 0x2c9   : > { %v2743_v37 = vpack.i.bf16 %v806_v36, %v779_v32  ;;  %2431 = vmatprep.subr.msk.bf16.mxu0 %vm3472_vm5, %v2430_v35  ;;  %v805_v43 = vld [vmem:[#allocation2 + $0x10] sm:$0xff] }
 0x2ca   : > { %v2783_v44 = vpack.i.bf16 %v805_v43, %v778_v30 }
 0x2cb   : > { %2744 = vrot.lane.b32.xlu0 %v2743_v37, %s4199_s26 }
 0x2cd   : > { %v795_v39 = vld [vmem:[#allocation2 + $0x18] sm:$0xff] }
 0x2ce   : > { %v2748_v41 = vpack.i.bf16 %v795_v39, %v793_v38  ;;  %v2433_v42 = vpack.c.bf16 %v795_v39, %v793_v38 }
 0x2d0   : > { %2749 = vrot.lane.b32.xlu1 %v2748_v41, %s4199_s26  ;;  %2434 = vmatpush1.bf16.msk.msra.mxu0 %vm3482_vm7, %v2433_v42 }
 0x2d1   : > { %2759 = vrot.lane.b32.xlu0 %v2748_v41, %s4197_s27 }
 0x2d4   : > { %2754 = vrot.lane.b32.xlu1 %v2743_v37, %s4197_s27 }
 0x2d5   : > { %2764 = vrot.lane.b32.xlu0 %v2743_v37, %s4203_s28 }
 0x2d8   : > { %2769 = vrot.lane.b32.xlu1 %v2748_v41, %s4203_s28 }
 0x2d9   : > { %2779 = vrot.lane.b32.xlu0 %v2748_v41, %s4201_s20 }
 0x2dc   : > { %2774 = vrot.lane.b32.xlu1 %v2743_v37, %s4201_s20 }
 0x2dd   : > { %2789 = vrot.lane.b32.xlu0 %v2783_v44, %s4197_s27  ;;  %s4210_s27 = smov 95  }
 0x2e0   : > { %2784 = vrot.lane.b32.xlu1 %v2783_v44, %s4199_s26  ;;  %s3257_s26 = smov 94  }
 0x2e1   : > { %2794 = vrot.lane.b32.xlu0 %v2743_v37, %s4207_s21 }
 0x2e4   : > { %2799 = vrot.lane.b32.xlu1 %v2748_v41, %s4207_s21 }
 0x2e5   : > { %2814 = vrot.lane.b32.xlu0 %v2783_v44, %s4201_s20  ;;  %s4235_s20 = smov 17  }
 0x2e8   : > { %2804 = vrot.lane.b32.xlu1 %v2783_v44, %s4203_s28  ;;  %s3258_s28 = smov [#allocation4]  }
 0x2e9   : > { %2819 = vrot.lane.b32.xlu0 %v2748_v41, %s4205_s0 }
 0x2ec   : > { %2809 = vrot.lane.b32.xlu1 %v2743_v37, %s4205_s0 }
 0x2ed   : > { %2829 = vrot.lane.b32.xlu0 %v2783_v44, %s4205_s0  ;;  %s4237_s0 = smov 126  }
 0x2f0   : > { %2824 = vrot.lane.b32.xlu1 %v2783_v44, %s4207_s21 }
 0x2f1   : > { %2834 = vrot.lane.b32.xlu0 %v2743_v37, %s4210_s27 }
 0x2f4   : > { %2839 = vrot.lane.b32.xlu1 %v2748_v41, %s4210_s27 }
 0x2f5   : > { %2854 = vrot.lane.b32.xlu0 %v2783_v44, %s3257_s26 }
 0x2f8   : > { %2844 = vrot.lane.b32.xlu1 %v2783_v44, %s4210_s27 }
 0x2f9   : > { %2859 = vrot.lane.b32.xlu0 %v2748_v41, %s3257_s26 }
 0x2fc   : > { %2849 = vrot.lane.b32.xlu1 %v2743_v37, %s3257_s26 }
 0x2fd   : > { %1038 = vperm.xlu0 %2741, %v1028_v46  }
 0x300   : > { %1033 = vperm.xlu1 %2742, %v1027_v47  }
 0x301   : > { %1139 = vperm.xlu0 %2741, %v1129_v48  }
 0x304   : > { %1134 = vperm.xlu1 %2742, %v1128_v49  }
 0x305   : > { %1048 = vperm.xlu0 %2741, %v1030_v50  }
 0x308   : > { %1043 = vperm.xlu1 %2742, %v1029_v51  }
 0x309   : > { %1149 = vperm.xlu0 %2741, %v1131_v52  }
 0x30c   : > { %1144 = vperm.xlu1 %2742, %v1130_v53  }
 0x33d   : > { %v2745_v54 = vpop.permute.xlu0 %2744 }
 0x33e   : > { %v2747_v63 = vunpack.i.h.bf16 %v2745_v54  ;;  %v2746_v3 = vunpack.i.l.bf16 %v2745_v54 }
 0x340   : > { %v958_v11 = vsel %vm954_vm8, %v2746_v3, %v2747_v63 }
 0x342   : > { %v2750_v55 = vpop.permute.xlu1 %2749 }
 0x343   : > { %v2760_v56 = vpop.permute.xlu0 %2759  ;;  %v2752_v0 = vunpack.i.h.bf16 %v2750_v55  ;;  %v2751_v5 = vunpack.i.l.bf16 %v2750_v55 }
 0x344   : > { %v2761_v17 = vunpack.i.l.bf16 %v2760_v56  ;;  %v2762_v22 = vunpack.i.h.bf16 %v2760_v56 }
 0x345   : > { %v957_v12 = vsel %vm954_vm8, %v2752_v0, %v2746_v3 }
 0x346   : > { %v2755_v57 = vpop.permute.xlu1 %2754 }
 0x347   : > { %v2765_v58 = vpop.permute.xlu0 %2764  ;;  %v2757_v6 = vunpack.i.h.bf16 %v2755_v57  ;;  %v2756_v7 = vunpack.i.l.bf16 %v2755_v57 }
 0x348   : > { %v2767_v27 = vunpack.i.h.bf16 %v2765_v58  ;;  %v2766_v28 = vunpack.i.l.bf16 %v2765_v58 }
 0x349   : > { %v833_v21 = vsel %vm829_vm9, %v2756_v7, %v2757_v6  ;;  %v832_v36 = vsel %vm829_vm9, %v2762_v22, %v2756_v7 }
 0x34a   : > { %v2770_v59 = vpop.permute.xlu1 %2769  ;;  %v858_v45 = vsel %vm854_vm13, %v2766_v28, %v2767_v27 }
 0x34b   : > { %v3532_v60 = vpop.permute.xlu0 %2779  ;;  %v2772_v31 = vunpack.i.h.bf16 %v2770_v59  ;;  %v2771_v37 = vunpack.i.l.bf16 %v2770_v59 }
 0x34c   : > { %v2781_v50 = vunpack.i.l.bf16 %v3532_v60  ;;  %v2782_v54 = vunpack.i.h.bf16 %v3532_v60 }
 0x34d   : > { %v857_v46 = vsel %vm854_vm13, %v2772_v31, %v2766_v28 }
 0x34e   : > { %v3534_v61 = vpop.permute.xlu1 %2774 }
 0x34f   : > { %v2790_v62 = vpop.permute.xlu0 %2789  ;;  %v2777_v24 = vunpack.i.h.bf16 %v3534_v61  ;;  %v2776_v39 = vunpack.i.l.bf16 %v3534_v61 }
 0x350   : > { %v2792_v4 = vunpack.i.h.bf16 %v2790_v62  ;;  %v2791_v1 = vunpack.i.l.bf16 %v2790_v62 }
 0x351   : > { %v979_v56 = vsel %vm975_vm15, %v2776_v39, %v2777_v24 }
 0x352   : > { %v2785_v2 = vpop.permute.xlu1 %2784  ;;  %v831_v15 = vsel %vm829_vm9, %v2791_v1, %v2792_v4  ;;  %v830_v29 = vsel %vm829_vm9, %v2761_v17, %v2791_v1  ;;  %v978_v4 = vsel %vm975_vm15, %v2782_v54, %v2776_v39 }
 0x353   : > { %v2787_v8 = vunpack.i.h.bf16 %v2785_v2  ;;  %v2786_v9 = vunpack.i.l.bf16 %v2785_v2  ;;  %v3536_v10 = vpop.permute.xlu0 %2794  ;;  %v2436_v30 = vpack.c.bf16 %v833_v21, %v831_v15  ;;  %v2439_v41 = vpack.c.bf16 %v832_v36, %v830_v29 }
 0x354   : > { %v2797_v55 = vunpack.i.h.bf16 %v3536_v10  ;;  %v2796_v59 = vunpack.i.l.bf16 %v3536_v10 }
 0x355   : > { %v955_v14 = vsel %vm954_vm8, %v2751_v5, %v2786_v9  ;;  %v956_v16 = vsel %vm954_vm8, %v2786_v9, %v2787_v8 }
 0x356   : > { %v3545_v18 = vpop.permute.xlu1 %2799  ;;  %v1008_v19 = vpack.c.bf16 %v958_v11, %v956_v16  ;;  %v1007_v20 = vpack.c.bf16 %v957_v12, %v955_v14  ;;  %v883_v10 = vsel %vm879_vm2, %v2796_v59, %v2797_v55 }
 0x357   : > { %v2815_v25 = vpop.permute.xlu0 %2814  ;;  %v2802_v58 = vunpack.i.h.bf16 %v3545_v18  ;;  %v2801_v5 = vunpack.i.l.bf16 %v3545_v18 }
 0x358   : > { %1077 = vmatprep.subr.bf16.mxu0 %v1008_v19  ;;  %v2817_v32 = vunpack.i.h.bf16 %v2815_v25  ;;  %v2816_v35 = vunpack.i.l.bf16 %v2815_v25 }
 0x359   : > { %1078 = vmatpush1.bf16.msra.mxu0 %v1007_v20  ;;  %v882_v9 = vsel %vm879_vm2, %v2802_v58, %v2796_v59  ;;  %v3106_v58 = vld [vmem:[%s4181_s2 + $0x14] ss:$8 sps:$4 sm:$0xff]   ;;  %v3108_v59 = vld [vmem:[%s4181_s2 + $0x10] ss:$8 sps:$4 sm:$0xff]  }
 0x35a   : > { %v2805_v34 = vpop.permute.xlu1 %2804  ;;  %2437 = vmatprep.subr.msk.bf16.mxu0 %vm3548_vm11, %v2436_v30  ;;  %v977_v49 = vsel %vm975_vm15, %v2816_v35, %v2817_v32  ;;  %v976_v61 = vsel %vm975_vm15, %v2781_v50, %v2816_v35 }
 0x35b   : > { %v2807_v42 = vunpack.i.h.bf16 %v2805_v34  ;;  %v2806_v43 = vunpack.i.l.bf16 %v2805_v34  ;;  %v2820_v44 = vpop.permute.xlu0 %2819  ;;  %v1014_v62 = vpack.c.bf16 %v979_v56, %v977_v49  ;;  %v1013_v7 = vpack.c.bf16 %v978_v4, %v976_v61 }
 0x35c   : > { %v2822_v11 = vunpack.i.h.bf16 %v2820_v44  ;;  %v2821_v17 = vunpack.i.l.bf16 %v2820_v44 }
 0x35d   : > { %v855_v47 = vsel %vm854_vm13, %v2771_v37, %v2806_v43  ;;  %v856_v48 = vsel %vm854_vm13, %v2806_v43, %v2807_v42  ;;  %2440 = vmatpush1.bf16.msk.msra.mxu0 %vm3566_vm14, %v2439_v41 }
 0x35e   : > { %v2445_v51 = vpack.c.bf16 %v857_v46, %v855_v47  ;;  %v2810_v52 = vpop.permute.xlu1 %2809  ;;  %v2442_v53 = vpack.c.bf16 %v858_v45, %v856_v48 }
 0x35f   : > { %v2830_v57 = vpop.permute.xlu0 %2829  ;;  %v2812_v63 = vunpack.i.h.bf16 %v2810_v52  ;;  %v2811_v3 = vunpack.i.l.bf16 %v2810_v52 }
 0x360   : > { %2443 = vmatprep.subr.msk.bf16.mxu0 %vm3472_vm5, %v2442_v53  ;;  %v2832_v60 = vunpack.i.h.bf16 %v2830_v57  ;;  %v2831_v0 = vunpack.i.l.bf16 %v2830_v57  ;;  %v3105_v57 = vld [vmem:[%s4181_s2] ss:$8 sps:$4 sm:$0xff]  }
 0x361   : > { %2446 = vmatpush1.bf16.msk.msra.mxu0 %vm3482_vm7, %v2445_v51  ;;  %v908_v12 = vsel %vm904_vm4, %v2811_v3, %v2812_v63  ;;  %v907_v21 = vsel %vm904_vm4, %v2822_v11, %v2811_v3 }
 0x362   : > { %v2825_v1 = vpop.permute.xlu1 %2824  ;;  %1083 = vmatprep.subr.bf16.mxu0 %v1014_v62  ;;  %v906_v16 = vsel %vm904_vm4, %v2831_v0, %v2832_v60  ;;  %v905_v25 = vsel %vm904_vm4, %v2821_v17, %v2831_v0 }
 0x363   : > { %v2827_v2 = vunpack.i.h.bf16 %v2825_v1  ;;  %v2826_v6 = vunpack.i.l.bf16 %v2825_v1  ;;  %v2835_v8 = vpop.permute.xlu0 %2834  ;;  %v2454_v28 = vpack.c.bf16 %v908_v12, %v906_v16  ;;  %v2457_v31 = vpack.c.bf16 %v907_v21, %v905_v25 }
 0x364   : > { %v2837_v26 = vunpack.i.h.bf16 %v2835_v8  ;;  %v2836_v27 = vunpack.i.l.bf16 %v2835_v8 }
 0x365   : > { %v880_v14 = vsel %vm879_vm2, %v2801_v5, %v2826_v6  ;;  %v881_v15 = vsel %vm879_vm2, %v2826_v6, %v2827_v2  ;;  %1084 = vmatpush1.bf16.msra.mxu0 %v1013_v7 }
 0x366   : > { %v2451_v18 = vpack.c.bf16 %v882_v9, %v880_v14  ;;  %v2840_v19 = vpop.permute.xlu1 %2839  ;;  %v2448_v20 = vpack.c.bf16 %v883_v10, %v881_v15  ;;  %v1000_v39 = vsel %vm996_vm6, %v2836_v27, %v2837_v26 }
 0x367   : > { %v2855_v22 = vpop.permute.xlu0 %2854  ;;  %v2842_v29 = vunpack.i.h.bf16 %v2840_v19  ;;  %v2841_v32 = vunpack.i.l.bf16 %v2840_v19 }
 0x368   : > { %2449 = vmatprep.subr.msk.bf16.mxu0 %vm3548_vm11, %v2448_v20  ;;  %v2857_v24 = vunpack.i.h.bf16 %v2855_v22  ;;  %v2856_v34 = vunpack.i.l.bf16 %v2855_v22 }
 0x369   : > { %2452 = vmatpush1.bf16.msk.msra.mxu0 %vm3566_vm14, %v2451_v18  ;;  %v999_v41 = vsel %vm996_vm6, %v2842_v29, %v2836_v27 }
 0x36a   : > { %v2845_v30 = vpop.permute.xlu1 %2844  ;;  %2455 = vmatprep.subr.msk.bf16.mxu0 %vm3472_vm5, %v2454_v28  ;;  %v931_v51 = vsel %vm929_vm10, %v2856_v34, %v2857_v24 }
 0x36b   : > { %v2847_v35 = vunpack.i.h.bf16 %v2845_v30  ;;  %v2846_v36 = vunpack.i.l.bf16 %v2845_v30  ;;  %v2860_v37 = vpop.permute.xlu0 %2859 }
 0x36c   : > { %v2861_v43 = vunpack.i.l.bf16 %v2860_v37  ;;  %v2862_v50 = vunpack.i.h.bf16 %v2860_v37 }
 0x36d   : > { %v997_v42 = vsel %vm996_vm6, %v2841_v32, %v2846_v36  ;;  %2458 = vmatpush1.bf16.msk.msra.mxu0 %vm3482_vm7, %v2457_v31  ;;  %v998_v44 = vsel %vm996_vm6, %v2846_v36, %v2847_v35 }
 0x36e   : > { %v1019_v45 = vpack.c.bf16 %v999_v41, %v997_v42  ;;  %v2850_v46 = vpop.permute.xlu1 %2849  ;;  %v1020_v47 = vpack.c.bf16 %v1000_v39, %v998_v44  ;;  %v930_v54 = vsel %vm929_vm10, %v2861_v43, %v2856_v34 }
 0x36f   : > { %v2852_v48 = vunpack.i.h.bf16 %v2850_v46  ;;  %v2851_v49 = vunpack.i.l.bf16 %v2850_v46 }
 0x370   : > { %1089 = vmatprep.subr.bf16.mxu0 %v1020_v47 }
 0x371   : > { %v933_v52 = vsel %vm929_vm10, %v2851_v49, %v2852_v48  ;;  %v932_v53 = vsel %vm929_vm10, %v2862_v50, %v2851_v49  ;;  %1090 = vmatpush1.bf16.msra.mxu0 %v1019_v45  ;;  %v1200_v49 = vld [vmem:[%s4192_s13] sm:$0xff] }
 0x372   : > { %v2460_v55 = vpack.c.bf16 %v933_v52, %v931_v51  ;;  %v2463_v56 = vpack.c.bf16 %v932_v53, %v930_v54  ;;  %2613 = vmatprep.mubr.msk.f32.mxu1 %vm1204_vm12, %v1200_v49  ;;  %v1467_v50 = vld [vmem:[%s4190_s11] sm:$0xff]  ;;  %v1468_v51 = vld [vmem:[%s4190_s11 + $0x8] sm:$0xff] }
 0x374   : > { %2461 = vmatprep.subr.msk.bf16.mxu0 %vm3548_vm11, %v2460_v55 }
 0x375   : > { %2464 = vmatpush1.bf16.msk.msra.mxu0 %vm3566_vm14, %v2463_v56 }
 0x378   : > { %1108 = vmatmul.mubr.bf16.vlgmr.msra.gmra.mrb[4].mxu0 %v3105_v57 }
 0x379   : > { %2466 = vmatprep.mubr.msk.bf16.mxu0 %vm523_vm0, %v3106_v58 }
 0x37c   : > { %v1039_v62 = vpop.permute.xlu0 %1038 }
 0x37f   : > { %v1034_v61 = vpop.permute.xlu1 %1033 }
 0x380   : > { %1118 = vmatmul.mubr.bf16.gmra.mrb[8].mxu0 %v3108_v59  ;;  %v1140_v3 = vpop.permute.xlu0 %1139 }
 0x381   : > { %2188 = vmatprep.mubr.bf16.mxu0 %v3247_v13 }
 0x383   : > { %v1135_v63 = vpop.permute.xlu1 %1134 }
 0x384   : > { %v1049_v12 = vpop.permute.xlu0 %1048 }
 0x387   : > { %v1044_v8 = vpop.permute.xlu1 %1043 }
 0x388   : > { %v1150_v28 = vpop.permute.xlu0 %1149 }
 0x38b   : > { %v1145_v20 = vpop.permute.xlu1 %1144 }
 0x44b   : > { %v1109_v60 = vpop.f32.mrb[4].mxu0 }
 0x44c   : > { %v1110_v0 = vadd.f32 %v1109_v60, %v1034_v61  ;;  %v1111_v4 = vpop.f32.mrb[5].mxu0 }
 0x44d   : > { %v1112_v1 = vadd.f32 %v1111_v4, %v1034_v61  ;;  %v1113_v5 = vpop.f32.mrb[6].mxu0 }
 0x44e   : > { %v3630_v2 = vadd.f32 %v1135_v63, %v1110_v0  ;;  %v1114_v6 = vadd.f32 %v1113_v5, %v1039_v62  ;;  %v1115_v7 = vpop.f32.mrb[7].mxu0 }
 0x44f   : > { %v3632_v9 = vadd.f32 %v1135_v63, %v1112_v1  ;;  %v1116_v10 = vadd.f32 %v1115_v7, %v1039_v62  ;;  %v1201_v1 = vld [vmem:[%s4192_s13 + $0x8] sm:$0xff] }
 0x450   : > { %v3634_v11 = vadd.f32 %v1140_v3, %v1114_v6  ;;  %v1176_v36 = vmul.f32 %v3630_v2, %v3630_v2  ;;  %v1202_v6 = vld [vmem:[%s4192_s13 + $0x10] sm:$0xff] }
 0x451   : > { %v3636_v14 = vadd.f32 %v1140_v3, %v1116_v10  ;;  %v1160_v15 = vadd.f32 %v3632_v9, %v3630_v2  ;;  %v1177_v37 = vmul.f32 %v3632_v9, %v3632_v9 }
 0x452   : > { %v1178_v34 = vmul.f32 %v3634_v11, %v3634_v11 }
 0x453   : > { %v1119_v16 = vpop.f32.mrb[8].mxu0  ;;  %1161 = vadd.xlane.f32.xlu1 %v1160_v15  ;;  %v1163_v17 = vadd.f32 %v3636_v14, %v3634_v11  ;;  %v1179_v39 = vmul.f32 %v3636_v14, %v3636_v14  ;;  %v1184_v41 = vadd.f32 %v1177_v37, %v1176_v36 }
 0x454   : > { %v1120_v18 = vadd.f32 %v1119_v16, %v1044_v8  ;;  %v1121_v19 = vpop.f32.mrb[9].mxu0 }
 0x455   : > { %v1122_v21 = vadd.f32 %v1121_v19, %v1044_v8  ;;  %v1123_v22 = vpop.f32.mrb[10].mxu0  ;;  %1164 = vadd.xlane.f32.xlu0 %v1163_v17  ;;  %v1187_v44 = vadd.f32 %v1179_v39, %v1178_v34 }
 0x456   : > { %v3642_v25 = vadd.f32 %v1145_v20, %v1120_v18  ;;  %v1124_v26 = vadd.f32 %v1123_v22, %v1049_v12  ;;  %v1125_v27 = vpop.f32.mrb[11].mxu0 }
 0x457   : > { %v3644_v29 = vadd.f32 %v1145_v20, %v1122_v21  ;;  %v1126_v30 = vadd.f32 %v1125_v27, %v1049_v12  ;;  %v1203_v12 = vld [vmem:[%s4192_s13 + $0x18] sm:$0xff] }
 0x458   : > { %v3646_v31 = vadd.f32 %v1150_v28, %v1124_v26  ;;  %v1180_v42 = vmul.f32 %v3642_v25, %v3642_v25 }
 0x459   : > { %v3648_v32 = vadd.f32 %v1150_v28, %v1126_v30  ;;  %v1166_v35 = vadd.f32 %v3644_v29, %v3642_v25  ;;  %v1181_v43 = vmul.f32 %v3644_v29, %v3644_v29 }
 0x45a   : > { %v1182_v45 = vmul.f32 %v3646_v31, %v3646_v31 }
 0x45b   : > { %1167 = vadd.xlane.f32.xlu0 %v1166_v35  ;;  %v1169_v24 = vadd.f32 %v3648_v32, %v3646_v31  ;;  %v1183_v46 = vmul.f32 %v3648_v32, %v3648_v32  ;;  %v1190_v47 = vadd.f32 %v1181_v43, %v1180_v42 }
 0x45d   : > { %1170 = vadd.xlane.f32.xlu1 %v1169_v24  ;;  %v1193_v48 = vadd.f32 %v1183_v46, %v1182_v45  ;;  %v1403_v45 = vld [vmem:[%s4189_s10] sm:$0xff] }
 0x45f   : > { %1185 = vadd.xlane.f32.xlu0 %v1184_v41 }
 0x461   : > { %1188 = vadd.xlane.f32.xlu1 %v1187_v44  ;;  %v1404_v44 = vld [vmem:[%s4189_s10 + $0x8] sm:$0xff] }
 0x463   : > { %1191 = vadd.xlane.f32.xlu0 %v1190_v47 }
 0x465   : > { %1194 = vadd.xlane.f32.xlu1 %v1193_v48 }
 0x476   : > { %1473 = vperm.xlu1 %2742, %v1467_v50   ;;  %v1406_v50 = vld [vmem:[%s4189_s10 + $0x18] sm:$0xff] }
 0x479   : > { %1478 = vperm.xlu0 %2741, %v1468_v51   ;;  %v1405_v51 = vld [vmem:[%s4189_s10 + $0x10] sm:$0xff] }
 0x4e0   : > { %v1162_v52 = vpop.xlane.xlu1 %1161 }
 0x4e1   : > { %v1172_v54 = vmul.f32 0.00390625, %v1162_v52 }
 0x4e2   : > { %v1165_v53 = vpop.xlane.xlu0 %1164 }
 0x4e3   : > { %v1173_v55 = vmul.f32 0.00390625, %v1165_v53 }
 0x4e5   : > { %v2641_v56 = vpack.c.bf16 %v1173_v55, %v1172_v54 }
 0x4e7   : > { %2642 = vmatprep.subr.bf16.mxu1 %v2641_v56 }
 0x4e8   : > { %v1168_v57 = vpop.xlane.xlu0 %1167  ;;  %2644 = vmatpush3.bf16.msra.mxu1 %v2641_v56  ;;  %v1470_v56 = vld [vmem:[%s4190_s11 + $0x18] sm:$0xff] }
 0x4e9   : > { %v1174_v59 = vmul.f32 0.00390625, %v1168_v57  ;;  %v1469_v57 = vld [vmem:[%s4190_s11 + $0x10] sm:$0xff] }
 0x4ea   : > { %v1171_v58 = vpop.xlane.xlu1 %1170 }
 0x4eb   : > { %v1175_v61 = vmul.f32 0.00390625, %v1171_v58 }
 0x4ec   : > { %v1186_v62 = vpop.xlane.xlu0 %1185 }
 0x4ed   : > { %v2645_v63 = vpack.c.bf16 %v1175_v61, %v1174_v59  ;;  %v1196_v60 = vmul.f32 0.00390625, %v1186_v62 }
 0x4ee   : > { %v1189_v3 = vpop.xlane.xlu1 %1188 }
 0x4ef   : > { %v1197_v0 = vmul.f32 0.00390625, %v1189_v3  ;;  %2646 = vmatprep.subr.bf16.mxu1 %v2645_v63 }
 0x4f0   : > { %v1192_v4 = vpop.xlane.xlu0 %1191  ;;  %2648 = vmatpush3.bf16.msra.mxu1 %v2645_v63 }
 0x4f1   : > { %v2649_v5 = vpack.c.bf16 %v1197_v0, %v1196_v60  ;;  %v1198_v8 = vmul.f32 0.00390625, %v1192_v4 }
 0x4f2   : > { %v1195_v7 = vpop.xlane.xlu1 %1194 }
 0x4f3   : > { %v1199_v10 = vmul.f32 0.00390625, %v1195_v7  ;;  %2614 = vmatmul.mubr.msk.f32.vlgmr.msra.gmra.mrb[0].mxu1 %vm1204_vm12, %v1201_v1  ;;  %2650 = vmatprep.subr.bf16.mxu1 %v2649_v5 }
 0x4f4   : > { %2652 = vmatpush3.bf16.msra.mxu1 %v2649_v5  ;;  %2616 = vmatprep.mubr.msk.f32.mxu1 %vm1204_vm12, %v1202_v6 }
 0x4f5   : > { %v2653_v15 = vpack.c.bf16 %v1199_v10, %v1198_v8 }
 0x4f6   : > { %v1474_v59 = vpop.permute.xlu1 %1473 }
 0x4f7   : > { %2617 = vmatmul.mubr.msk.f32.gmra.mrb[2].mxu1 %vm1204_vm12, %v1203_v12  ;;  %2654 = vmatprep.subr.bf16.mxu1 %v2653_v15 }
 0x4f8   : > { %2656 = vmatpush3.bf16.msra.mxu1 %v2653_v15  ;;  %2627 = vmatprep.mubr.msk.f32.mxu1 %vm1204_vm12, %v1200_v49  ;;  %v1479_v58 = vpop.permute.xlu0 %1478 }
 0x4fb   : > { %2628 = vmatmul.mubr.msk.f32.vlgmr.msra.gmra.mrb[4].mxu1 %vm1204_vm12, %v1201_v1 }
 0x4fc   : > { %2630 = vmatprep.mubr.msk.f32.mxu1 %vm1204_vm12, %v1202_v6 }
 0x4ff   : > { %2631 = vmatmul.mubr.msk.f32.gmra.mrb[6].mxu1 %vm1204_vm12, %v1203_v12 }
 0x5c6   : > { %v2615_v16 = vpop.f32.mrb[0].mxu1 }
 0x5c7   : > { %1418 = vperm.xlu1 %2742, %v2615_v16   ;;  %v1283_v17 = vpop.f32.mrb[1].mxu1  ;;  %v1388_v20 = vmul.f32 %v2615_v16, %v2615_v16 }
 0x5c8   : > { %1413 = vperm.xlu0 %2741, %v1283_v17   ;;  %v1387_v21 = vmul.f32 %v1283_v17, %v1283_v17 }
 0x5ca   : > { %v2618_v18 = vpop.f32.mrb[2].mxu1 }
 0x5cb   : > { %v1293_v19 = vpop.f32.mrb[3].mxu1  ;;  %v1390_v30 = vmul.f32 %v2618_v18, %v2618_v18 }
 0x5cc   : > { %1428 = vperm.xlu0 %2741, %v2618_v18   ;;  %1423 = vperm.xlu1 %2742, %v1293_v19   ;;  %v1389_v36 = vmul.f32 %v1293_v19, %v1293_v19 }
 0x5ce   : > { %v2629_v22 = vpop.f32.mrb[4].mxu1 }
 0x5cf   : > { %v1392_v26 = vsub.f32 %v2629_v22, %v1388_v20  ;;  %v1368_v27 = vpop.f32.mrb[5].mxu1 }
 0x5d0   : > { %v1391_v28 = vsub.f32 %v1368_v27, %v1387_v21 }
 0x5d1   : > { %v1396_v35 = vadd.f32 1e-05, %v1392_v26 }
 0x5d2   : > { %v1395_v37 = vadd.f32 1e-05, %v1391_v28  ;;  %v2632_v24 = vpop.f32.mrb[6].mxu1 }
 0x5d3   : > { %3139 = vrsqrt.f32 %v1396_v35  ;;  %v1394_v34 = vsub.f32 %v2632_v24, %v1390_v30  ;;  %v1378_v39 = vpop.f32.mrb[7].mxu1 }
 0x5d4   : > { %3141 = vrsqrt.f32 %v1395_v37  ;;  %v1393_v41 = vsub.f32 %v1378_v39, %v1389_v36 }
 0x5d5   : > { %v1398_v42 = vadd.f32 1e-05, %v1394_v34 }
 0x5d6   : > { %v1397_v43 = vadd.f32 1e-05, %v1393_v41 }
 0x5d7   : > { %3143 = vrsqrt.f32 %v1398_v42 }
 0x5d8   : > { %3145 = vrsqrt.f32 %v1397_v43 }
 0x5dd   : > { %v3140_v46 = vpop.eup %3139 }
 0x5de   : > { %v3142_v47 = vpop.eup %3141  ;;  %v1408_v48 = vmul.f32 %v3140_v46, %v1404_v44 }
 0x5df   : > { %v1407_v49 = vmul.f32 %v3142_v47, %v1403_v45 }
 0x5e0   : > { %1446 = vperm.xlu0 %2741, %v1408_v48  }
 0x5e1   : > { %v3144_v52 = vpop.eup %3143  ;;  %1441 = vperm.xlu1 %2742, %v1407_v49  }
 0x5e2   : > { %v3146_v53 = vpop.eup %3145  ;;  %v1410_v54 = vmul.f32 %v3144_v52, %v1406_v50 }
 0x5e3   : > { %v1409_v55 = vmul.f32 %v3146_v53, %v1405_v51 }
 0x5e4   : > { %1456 = vperm.xlu0 %2741, %v1410_v54  }
 0x5e5   : > { %1451 = vperm.xlu1 %2742, %v1409_v55  }
 0x5e8   : > { %1488 = vperm.xlu0 %2741, %v1470_v56  }
 0x5e9   : > { %1483 = vperm.xlu1 %2742, %v1469_v57  }
 0x646   : > { %v1419_v62 = vpop.permute.xlu1 %1418 }
 0x647   : > { %v1414_v61 = vpop.permute.xlu0 %1413  ;;  %v1433_v60 = vsub.f32 %v3634_v11, %v1419_v62  ;;  %v1434_v0 = vsub.f32 %v3636_v14, %v1419_v62 }
 0x648   : > { %v1431_v4 = vsub.f32 %v3630_v2, %v1414_v61  ;;  %v1432_v1 = vsub.f32 %v3632_v9, %v1414_v61 }
 0x64b   : > { %v1429_v63 = vpop.permute.xlu0 %1428  ;;  %v1424_v3 = vpop.permute.xlu1 %1423 }
 0x64c   : > { %v1437_v14 = vsub.f32 %v3646_v31, %v1429_v63  ;;  %v1438_v2 = vsub.f32 %v3648_v32, %v1429_v63  ;;  %v1435_v21 = vsub.f32 %v3642_v25, %v1424_v3  ;;  %v1436_v22 = vsub.f32 %v3644_v29, %v1424_v3 }
 0x65f   : > { %v1447_v5 = vpop.permute.xlu0 %1446 }
 0x660   : > { %v1461_v6 = vmul.f32 %v1447_v5, %v1433_v60  ;;  %v1462_v7 = vmul.f32 %v1447_v5, %v1434_v0  ;;  %v1442_v8 = vpop.permute.xlu1 %1441 }
 0x661   : > { %v1459_v10 = vmul.f32 %v1442_v8, %v1431_v4  ;;  %v1460_v12 = vmul.f32 %v1442_v8, %v1432_v1 }
 0x662   : > { %v3718_v15 = vadd.f32 %v1479_v58, %v1461_v6  ;;  %v3720_v16 = vadd.f32 %v1479_v58, %v1462_v7 }
 0x663   : > { %v3722_v17 = vadd.f32 %v1474_v59, %v1459_v10  ;;  %v3724_v18 = vadd.f32 %v1474_v59, %v1460_v12  ;;  %v1457_v11 = vpop.permute.xlu0 %1456 }
 0x664   : > { %v1501_v9 = vsub.f32 0.0, %v3718_v15  ;;  %v1502_v19 = vsub.f32 0.0, %v3720_v16  ;;  %v1452_v20 = vpop.permute.xlu1 %1451  ;;  %v1465_v35 = vmul.f32 %v1457_v11, %v1437_v14  ;;  %v1466_v36 = vmul.f32 %v1457_v11, %v1438_v2 }
 0x665   : > { %v1499_v26 = vsub.f32 0.0, %v3722_v17  ;;  %v1500_v27 = vsub.f32 0.0, %v3724_v18  ;;  %v1463_v32 = vmul.f32 %v1452_v20, %v1435_v21  ;;  %v1464_v24 = vmul.f32 %v1452_v20, %v1436_v22 }
 0x666   : > { %v1511_v28 = vmul.f32 1.442695, %v1501_v9  ;;  %v1513_v30 = vmul.f32 1.442695, %v1502_v19 }
 0x667   : > { %v1507_v31 = vmul.f32 1.442695, %v1499_v26  ;;  %v1509_v37 = vmul.f32 1.442695, %v1500_v27  ;;  %v1489_v34 = vpop.permute.xlu0 %1488 }
 0x668   : > { %3147 = vpow2.f32 %v1511_v28  ;;  %v3734_v39 = vadd.f32 %v1489_v34, %v1465_v35  ;;  %v3736_v41 = vadd.f32 %v1489_v34, %v1466_v36  ;;  %v1484_v25 = vpop.permute.xlu1 %1483 }
 0x669   : > { %3149 = vpow2.f32 %v1513_v30  ;;  %v1495_v29 = vadd.f32 %v1484_v25, %v1463_v32  ;;  %v1496_v42 = vadd.f32 %v1484_v25, %v1464_v24 }
 0x66a   : > { %3151 = vpow2.f32 %v1507_v31  ;;  %v1505_v43 = vsub.f32 0.0, %v3734_v39  ;;  %v1506_v44 = vsub.f32 0.0, %v3736_v41 }
 0x66b   : > { %3153 = vpow2.f32 %v1509_v37  ;;  %v1503_v45 = vsub.f32 0.0, %v1495_v29  ;;  %v1504_v46 = vsub.f32 0.0, %v1496_v42 }
 0x66c   : > { %v1519_v47 = vmul.f32 1.442695, %v1505_v43  ;;  %v1521_v48 = vmul.f32 1.442695, %v1506_v44 }
 0x66d   : > { %v1515_v49 = vmul.f32 1.442695, %v1503_v45  ;;  %v1517_v50 = vmul.f32 1.442695, %v1504_v46 }
 0x66e   : > { %3155 = vpow2.f32 %v1519_v47 }
 0x66f   : > { %3157 = vpow2.f32 %v1521_v48 }
 0x670   : > { %3159 = vpow2.f32 %v1515_v49 }
 0x671   : > { %3161 = vpow2.f32 %v1517_v50 }
 0x672   : > { %v3148_v51 = vpop.eup %3147 }
 0x673   : > { %v3150_v52 = vpop.eup %3149  ;;  %v1525_v53 = vadd.f32 1.0, %v3148_v51 }
 0x674   : > { %v3152_v54 = vpop.eup %3151  ;;  %v1526_v55 = vadd.f32 1.0, %v3150_v52 }
 0x675   : > { %v3154_v56 = vpop.eup %3153  ;;  %3163 = vrcp.f32 %v1525_v53  ;;  %v1523_v57 = vadd.f32 1.0, %v3152_v54  ;;  %v3113_v54 = vld [vmem:[%s4183_s4 + $0x4] ss:$12 sps:$4 sm:$0xff]  }
 0x676   : > { %3165 = vrcp.f32 %v1526_v55  ;;  %v1524_v58 = vadd.f32 1.0, %v3154_v56  ;;  %2135 = vmatprep.mubr.bf16.mxu1 %v3113_v54  ;;  %v2044_v55 = vld [vmem:[%s4184_s5 + $0x8] sm:$0xff]  ;;  %v2043_v56 = vld [vmem:[%s4184_s5] sm:$0xff] }
 0x677   : > { %3167 = vrcp.f32 %v1523_v57  ;;  %v2046_v57 = vld [vmem:[%s4184_s5 + $0x18] sm:$0xff] }
 0x678   : > { %v3156_v59 = vpop.eup %3155  ;;  %3169 = vrcp.f32 %v1524_v58  ;;  %v2045_v58 = vld [vmem:[%s4184_s5 + $0x10] sm:$0xff] }
 0x679   : > { %v3158_v61 = vpop.eup %3157  ;;  %v1529_v3 = vadd.f32 1.0, %v3156_v59  ;;  %v2216_v59 = vld [vmem:[%s4186_s7 + $0x8] sm:$0xff] }
 0x67a   : > { %v3160_v62 = vpop.eup %3159  ;;  %v1530_v0 = vadd.f32 1.0, %v3158_v61  ;;  %v2215_v61 = vld [vmem:[%s4186_s7] sm:$0xff] }
 0x67b   : > { %v3162_v63 = vpop.eup %3161  ;;  %v1527_v60 = vadd.f32 1.0, %v3160_v62  ;;  %v2218_v62 = vld [vmem:[%s4186_s7 + $0x18] sm:$0xff] }
 0x67c   : > { %v1528_v4 = vadd.f32 1.0, %v3162_v63  ;;  %v2217_v63 = vld [vmem:[%s4186_s7 + $0x10] sm:$0xff] }
 0x67d   : > { %3171 = vrcp.f32 %v1527_v60 }
 0x67e   : > { %3173 = vrcp.f32 %v1528_v4 }
 0x67f   : > { %v3164_v1 = vpop.eup %3163  ;;  %3175 = vrcp.f32 %v1529_v3 }
 0x680   : > { %v3166_v5 = vpop.eup %3165  ;;  %3177 = vrcp.f32 %v1530_v0  ;;  %v1541_v6 = vmul.f32 %v3164_v1, %v3718_v15 }
 0x681   : > { %v3168_v7 = vpop.eup %3167  ;;  %v1542_v8 = vmul.f32 %v3166_v5, %v3720_v16 }
 0x682   : > { %v3170_v10 = vpop.eup %3169  ;;  %1567 = vrot.lane.b32.xlu1 %v1541_v6, %s4235_s20  ;;  %v1539_v12 = vmul.f32 %v3168_v7, %v3722_v17 }
 0x683   : > { %1569 = vrot.lane.b32.xlu0 %v1542_v8, %s4235_s20  ;;  %v1540_v11 = vmul.f32 %v3170_v10, %v3724_v18 }
 0x686   : > { %1563 = vrot.lane.b32.xlu1 %v1539_v12, %s4235_s20 }
 0x687   : > { %v3172_v14 = vpop.eup %3171  ;;  %1565 = vrot.lane.b32.xlu0 %v1540_v11, %s4235_s20 }
 0x688   : > { %v3174_v2 = vpop.eup %3173  ;;  %v1543_v9 = vmul.f32 %v3172_v14, %v1495_v29 }
 0x689   : > { %v3176_v15 = vpop.eup %3175  ;;  %v1544_v19 = vmul.f32 %v3174_v2, %v1496_v42 }
 0x68a   : > { %v3178_v20 = vpop.eup %3177  ;;  %1571 = vrot.lane.b32.xlu1 %v1543_v9, %s4235_s20  ;;  %v1545_v16 = vmul.f32 %v3176_v15, %v3734_v39 }
 0x68b   : > { %1573 = vrot.lane.b32.xlu0 %v1544_v19, %s4235_s20  ;;  %v1546_v17 = vmul.f32 %v3178_v20, %v3736_v41 }
 0x68e   : > { %1575 = vrot.lane.b32.xlu1 %v1545_v16, %s4235_s20 }
 0x68f   : > { %1577 = vrot.lane.b32.xlu0 %v1546_v17, %s4235_s20  ;;  %s3187_s20 = sshll.u32 %s3258_s28, 4  ;;  %s3188_s20 = int_to_ptr.vmem [resolvable:$false] %s3187_s20 }
 0x6f4   : > { %v1568_v18 = vpop.permute.xlu1 %1567 }
 0x6f5   : > { %v1570_v21 = vpop.permute.xlu0 %1569  ;;  %1598 = vst.msk [vmem:[#allocation3 + $0x18] sm:$0xff] %vm786_vm3, %v1568_v18 }
 0x6f6   : > { %1600 = vst.msk [vmem:[#allocation3 + $0x28] sm:$0xff] %vm760_vm1, %v1570_v21  ;;  %v1580_v22 = vsel %vm760_vm1, %v1568_v18, %v1570_v21 }
 0x6f8   : > { %v1564_v26 = vpop.permute.xlu1 %1563 }
 0x6f9   : > { %v1566_v27 = vpop.permute.xlu0 %1565  ;;  %1595 = vst.msk [vmem:[#allocation3] sm:$0xff] %vm786_vm3, %v1564_v26 }
 0x6fa   : > { %1597 = vst.msk [vmem:[#allocation3 + $0x10] sm:$0xff] %vm760_vm1, %v1566_v27  ;;  %v1579_v28 = vsel %vm760_vm1, %v1564_v26, %v1566_v27 }
 0x6fb   : > { %v2482_v30 = vpack.c.bf16 %v1580_v22, %v1579_v28 }
 0x6fc   : > { %v1572_v35 = vpop.permute.xlu1 %1571  ;;  %v1609_v39 = vld [vmem:[#allocation3 + $0x18] sm:$0xff] }
 0x6fd   : > { %v1574_v36 = vpop.permute.xlu0 %1573  ;;  %1601 = vst.msk [vmem:[#allocation3 + $0x30] sm:$0xff] %vm786_vm3, %v1572_v35  ;;  %v1624_v31 = vld [vmem:[#allocation3 + $0x28] sm:$0xff]  ;;  %2483 = vmatprep.subr.msk.bf16.mxu1 %vm3472_vm5, %v2482_v30 }
 0x6fe   : > { %1603 = vst.msk [vmem:[#allocation3 + $0x40] sm:$0xff] %vm760_vm1, %v1574_v36  ;;  %v1581_v37 = vsel %vm760_vm1, %v1572_v35, %v1574_v36  ;;  %v3765_v32 = vpack.i.bf16 %v1624_v31, %v1580_v22 }
 0x700   : > { %2864 = vrot.lane.b32.xlu0 %v3765_v32, %s4236_s25  ;;  %v1576_v24 = vpop.permute.xlu1 %1575  ;;  %v1607_v34 = vld [vmem:[#allocation3] sm:$0xff] }
 0x701   : > { %v1578_v41 = vpop.permute.xlu0 %1577  ;;  %1604 = vst.msk [vmem:[#allocation3 + $0x48] sm:$0xff] %vm786_vm3, %v1576_v24  ;;  %v3770_v25 = vpack.i.bf16 %v1609_v39, %v1607_v34  ;;  %v2485_v29 = vpack.c.bf16 %v1609_v39, %v1607_v34  ;;  %v1623_v48 = vld [vmem:[#allocation3 + $0x10] sm:$0xff] }
 0x702   : > { %1606 = vst.msk [vmem:[#allocation3 + $0x58] sm:$0xff] %vm760_vm1, %v1578_v41  ;;  %v1582_v42 = vsel %vm760_vm1, %v1576_v24, %v1578_v41  ;;  %v2943_v49 = vpack.i.bf16 %v1623_v48, %v1579_v28 }
 0x703   : > { %2869 = vrot.lane.b32.xlu1 %v3770_v25, %s4236_s25  ;;  %2486 = vmatpush1.bf16.msk.msra.mxu1 %vm3482_vm7, %v2485_v29  ;;  %v2488_v43 = vpack.c.bf16 %v1582_v42, %v1581_v37 }
 0x704   : > { %2874 = vrot.lane.b32.xlu0 %v3765_v32, %s4237_s0  ;;  %v1611_v44 = vld [vmem:[#allocation3 + $0x30] sm:$0xff] }
 0x705   : > { %2489 = vmatprep.subr.msk.bf16.mxu1 %vm3472_vm5, %v2488_v43  ;;  %v1625_v50 = vld [vmem:[#allocation3 + $0x40] sm:$0xff] }
 0x706   : > { %v2993_v51 = vpack.i.bf16 %v1625_v50, %v1581_v37 }
 0x707   : > { %2879 = vrot.lane.b32.xlu1 %v3770_v25, %s4237_s0 }
 0x708   : > { %2884 = vrot.lane.b32.xlu0 %v3765_v32, %s4238_s8  ;;  %v1613_v45 = vld [vmem:[#allocation3 + $0x48] sm:$0xff] }
 0x709   : > { %v2491_v46 = vpack.c.bf16 %v1613_v45, %v1611_v44  ;;  %v3038_v47 = vpack.i.bf16 %v1613_v45, %v1611_v44  ;;  %v1626_v52 = vld [vmem:[#allocation3 + $0x58] sm:$0xff] }
 0x70a   : > { %v2948_v53 = vpack.i.bf16 %v1626_v52, %v1582_v42 }
 0x70b   : > { %2889 = vrot.lane.b32.xlu1 %v3770_v25, %s4238_s8  ;;  %2492 = vmatpush1.bf16.msk.msra.mxu1 %vm3482_vm7, %v2491_v46 }
 0x70c   : > { %2894 = vrot.lane.b32.xlu0 %v3765_v32, %s4239_s9 }
 0x70f   : > { %2899 = vrot.lane.b32.xlu1 %v3770_v25, %s4239_s9 }
 0x710   : > { %2904 = vrot.lane.b32.xlu0 %v3765_v32, %s4240_s12 }
 0x713   : > { %2909 = vrot.lane.b32.xlu1 %v3770_v25, %s4240_s12 }
 0x714   : > { %2944 = vrot.lane.b32.xlu0 %v2943_v49, %s3257_s26 }
 0x717   : > { %2914 = vrot.lane.b32.xlu1 %v3765_v32, %s3257_s26 }
 0x718   : > { %2954 = vrot.lane.b32.xlu0 %v3038_v47, %s4236_s25 }
 0x71b   : > { %2919 = vrot.lane.b32.xlu1 %v2943_v49, %s4236_s25 }
 0x71c   : > { %2964 = vrot.lane.b32.xlu0 %v3038_v47, %s4237_s0 }
 0x71f   : > { %2924 = vrot.lane.b32.xlu1 %v2943_v49, %s4237_s0 }
 0x720   : > { %2974 = vrot.lane.b32.xlu0 %v3038_v47, %s4238_s8 }
 0x723   : > { %2929 = vrot.lane.b32.xlu1 %v2943_v49, %s4238_s8 }
 0x724   : > { %2984 = vrot.lane.b32.xlu0 %v3038_v47, %s4239_s9 }
 0x727   : > { %2934 = vrot.lane.b32.xlu1 %v2943_v49, %s4239_s9 }
 0x728   : > { %2994 = vrot.lane.b32.xlu0 %v2993_v51, %s4236_s25 }
 0x72b   : > { %2939 = vrot.lane.b32.xlu1 %v2943_v49, %s4240_s12 }
 0x72c   : > { %2999 = vrot.lane.b32.xlu0 %v3038_v47, %s4240_s12 }
 0x72f   : > { %2949 = vrot.lane.b32.xlu1 %v2948_v53, %s4236_s25  ;;  %s3189_s25 = scalar_lea.vmem %s3188_s20, 2048 }
 0x730   : > { %3009 = vrot.lane.b32.xlu0 %v2993_v51, %s4237_s0 }
 0x733   : > { %2959 = vrot.lane.b32.xlu1 %v2948_v53, %s4237_s0 }
 0x734   : > { %3014 = vrot.lane.b32.xlu0 %v2943_v49, %s4241_s15 }
 0x737   : > { %2969 = vrot.lane.b32.xlu1 %v2948_v53, %s4238_s8 }
 0x738   : > { %3029 = vrot.lane.b32.xlu0 %v2993_v51, %s4238_s8  ;;  %s473_s8 = sand.u32 1, %s3237_s30  }
 0x73b   : > { %2979 = vrot.lane.b32.xlu1 %v2948_v53, %s4239_s9 }
 0x73c   : > { %3034 = vrot.lane.b32.xlu0 %v3770_v25, %s4241_s15 }
 0x73f   : > { %2989 = vrot.lane.b32.xlu1 %v2948_v53, %s4240_s12 }
 0x740   : > { %3049 = vrot.lane.b32.xlu0 %v2993_v51, %s4239_s9 }
 0x743   : > { %3004 = vrot.lane.b32.xlu1 %v3770_v25, %s3257_s26 }
 0x744   : > { %3054 = vrot.lane.b32.xlu0 %v3038_v47, %s4241_s15 }
 0x747   : > { %3019 = vrot.lane.b32.xlu1 %v3765_v32, %s4241_s15 }
 0x748   : > { %3064 = vrot.lane.b32.xlu0 %v2993_v51, %s4240_s12  ;;  %s2566_s12 = sshll.u32 %s3357_s17, 10  ;;  %s4138_s17 = scalar_lea.sflag [#allocation5], %s473_s8 }
 0x749   : > { %s4129_s21 = scalar_lea.hbm %s4193_s14, %s2566_s12 }
 0x74b   : > { %3024 = vrot.lane.b32.xlu1 %v2948_v53, %s3257_s26 }
 0x74c   : > { %3069 = vrot.lane.b32.xlu0 %v2993_v51, %s3257_s26 }
 0x74f   : > { %3039 = vrot.lane.b32.xlu1 %v3038_v47, %s3257_s26 }
 0x750   : > { %3074 = vrot.lane.b32.xlu0 %v2993_v51, %s4241_s15 }
 0x753   : > { %3044 = vrot.lane.b32.xlu1 %v2948_v53, %s4241_s15 }
 0x754   : > { %3079 = vrot.lane.b32.xlu0 %v3765_v32, %s4242_s22 }
 0x757   : > { %3059 = vrot.lane.b32.xlu1 %v2943_v49, %s4242_s22 }
 0x758   : > { %3094 = vrot.lane.b32.xlu0 %v2993_v51, %s4242_s22 }
 0x75b   : > { %3084 = vrot.lane.b32.xlu1 %v3770_v25, %s4242_s22 }
 0x75c   : > { %3099 = vrot.lane.b32.xlu0 %v3038_v47, %s4242_s22 }
 0x75f   : > { %3089 = vrot.lane.b32.xlu1 %v2948_v53, %s4242_s22 }
 0x760   : > { %2054 = vperm.xlu0 %2741, %v2044_v55  }
 0x763   : > { %2049 = vperm.xlu1 %2742, %v2043_v56  }
 0x764   : > { %2064 = vperm.xlu0 %2741, %v2046_v57  }
 0x767   : > { %2059 = vperm.xlu1 %2742, %v2045_v58  }
 0x768   : > { %2226 = vperm.xlu0 %2741, %v2216_v59  }
 0x76b   : > { %2221 = vperm.xlu1 %2742, %v2215_v61  }
 0x76c   : > { %2236 = vperm.xlu0 %2741, %v2218_v62  }
 0x76f   : > { %2231 = vperm.xlu1 %2742, %v2217_v63  }
 0x772   : > { %v2865_v3 = vpop.permute.xlu0 %2864 }
 0x773   : > { %v2867_v20 = vunpack.i.h.bf16 %v2865_v3  ;;  %v2866_v16 = vunpack.i.l.bf16 %v2865_v3 }
 0x775   : > { %v2870_v60 = vpop.permute.xlu1 %2869  ;;  %v1906_v32 = vsel %vm954_vm8, %v2866_v16, %v2867_v20 }
 0x776   : > { %v3869_v0 = vpop.permute.xlu0 %2874  ;;  %v2872_v17 = vunpack.i.h.bf16 %v2870_v60  ;;  %v2871_v27 = vunpack.i.l.bf16 %v2870_v60 }
 0x777   : > { %v2877_v46 = vunpack.i.h.bf16 %v3869_v0  ;;  %v2876_v47 = vunpack.i.l.bf16 %v3869_v0 }
 0x778   : > { %v1905_v36 = vsel %vm954_vm8, %v2872_v17, %v2866_v16 }
 0x779   : > { %v3871_v4 = vpop.permute.xlu1 %2879  ;;  %v1666_v58 = vsel %vm829_vm9, %v2876_v47, %v2877_v46 }
 0x77a   : > { %v3873_v1 = vpop.permute.xlu0 %2884  ;;  %v2882_v60 = vunpack.i.h.bf16 %v3871_v4  ;;  %v2881_v0 = vunpack.i.l.bf16 %v3871_v4 }
 0x77c   : > { %v1665_v4 = vsel %vm829_vm9, %v2882_v60, %v2876_v47 }
 0x77d   : > { %v3875_v5 = vpop.permute.xlu1 %2889 }
 0x77e   : > { %v3877_v6 = vpop.permute.xlu0 %2894 }
 0x781   : > { %v3879_v7 = vpop.permute.xlu1 %2899 }
 0x782   : > { %v3881_v8 = vpop.permute.xlu0 %2904 }
 0x785   : > { %v3883_v10 = vpop.permute.xlu1 %2909 }
 0x786   : > { %v3885_v12 = vpop.permute.xlu0 %2944 }
 0x787   : > { %v2947_v11 = vunpack.i.h.bf16 %v3885_v12  ;;  %v2946_v14 = vunpack.i.l.bf16 %v3885_v12 }
 0x789   : > { %v3889_v2 = vpop.permute.xlu1 %2914  ;;  %v1856_v18 = vsel %vm929_vm10, %v2946_v14, %v2947_v11 }
 0x78a   : > { %v2917_v9 = vunpack.i.h.bf16 %v3889_v2  ;;  %v2916_v15 = vunpack.i.l.bf16 %v3889_v2  ;;  %v2955_v19 = vpop.permute.xlu0 %2954 }
 0x78b   : > { %v2957_v53 = vunpack.i.h.bf16 %v2955_v19  ;;  %v2956_v54 = vunpack.i.l.bf16 %v2955_v19 }
 0x78c   : > { %v1858_v21 = vsel %vm929_vm10, %v2916_v15, %v2917_v9 }
 0x78d   : > { %v2542_v22 = vpack.c.bf16 %v1858_v21, %v1856_v18  ;;  %v2920_v26 = vpop.permute.xlu1 %2919 }
 0x78e   : > { %v2922_v28 = vunpack.i.h.bf16 %v2920_v26  ;;  %v2921_v30 = vunpack.i.l.bf16 %v2920_v26  ;;  %v3899_v35 = vpop.permute.xlu0 %2964 }
 0x78f   : > { %2543 = vmatprep.subr.msk.bf16.mxu0 %vm3548_vm11, %v2542_v22 }
 0x790   : > { %v1903_v31 = vsel %vm954_vm8, %v2871_v27, %v2921_v30  ;;  %v1904_v37 = vsel %vm954_vm8, %v2921_v30, %v2922_v28 }
 0x791   : > { %v2003_v24 = vpack.c.bf16 %v1905_v36, %v1903_v31  ;;  %v2925_v34 = vpop.permute.xlu1 %2924  ;;  %v2004_v39 = vpack.c.bf16 %v1906_v32, %v1904_v37  ;;  %v2967_v36 = vunpack.i.h.bf16 %v3899_v35  ;;  %v2887_v37 = vunpack.i.h.bf16 %v3873_v1 }
 0x792   : > { %v3907_v41 = vpop.permute.xlu0 %2974  ;;  %v2927_v48 = vunpack.i.h.bf16 %v2925_v34  ;;  %v2926_v49 = vunpack.i.l.bf16 %v2925_v34  ;;  %v2886_v32 = vunpack.i.l.bf16 %v3873_v1  ;;  %v2892_v1 = vunpack.i.h.bf16 %v3875_v5 }
 0x793   : > { %2107 = vmatprep.subr.bf16.mxu1 %v2004_v39 }
 0x794   : > { %2108 = vmatpush1.bf16.msra.mxu1 %v2003_v24  ;;  %v1664_v59 = vsel %vm829_vm9, %v2926_v49, %v2927_v48  ;;  %v1663_v22 = vsel %vm829_vm9, %v2881_v0, %v2926_v49 }
 0x795   : > { %v3909_v25 = vpop.permute.xlu1 %2929  ;;  %v2494_v26 = vpack.c.bf16 %v1666_v58, %v1664_v59  ;;  %v2497_v24 = vpack.c.bf16 %v1665_v4, %v1663_v22  ;;  %v2977_v59 = vunpack.i.h.bf16 %v3907_v41 }
 0x796   : > { %v3911_v29 = vpop.permute.xlu0 %2984  ;;  %v2932_v27 = vunpack.i.h.bf16 %v3909_v25  ;;  %v2931_v28 = vunpack.i.l.bf16 %v3909_v25  ;;  %v2966_v25 = vunpack.i.l.bf16 %v3899_v35  ;;  %v1714_v35 = vsel %vm854_vm13, %v2886_v32, %v2887_v37 }
 0x799   : > { %v3913_v42 = vpop.permute.xlu1 %2934 }
 0x79a   : > { %v2995_v43 = vpop.permute.xlu0 %2994 }
 0x79b   : > { %v2997_v50 = vunpack.i.h.bf16 %v2995_v43  ;;  %v2996_v51 = vunpack.i.l.bf16 %v2995_v43  ;;  %v1712_v43 = vsel %vm854_vm13, %v2931_v28, %v2932_v27  ;;  %v2901_v27 = vunpack.i.l.bf16 %v3879_v7 }
 0x79d   : > { %v3915_v44 = vpop.permute.xlu1 %2939  ;;  %v1907_v61 = vsel %vm954_vm8, %v2956_v54, %v2996_v51  ;;  %v1908_v63 = vsel %vm954_vm8, %v2996_v51, %v2997_v50 }
 0x79e   : > { %v3917_v45 = vpop.permute.xlu0 %2999 }
 0x7a1   : > { %v2950_v52 = vpop.permute.xlu1 %2949 }
 0x7a2   : > { %v2952_v55 = vunpack.i.h.bf16 %v2950_v52  ;;  %v2951_v56 = vunpack.i.l.bf16 %v2950_v52  ;;  %v3010_v57 = vpop.permute.xlu0 %3009  ;;  %v2891_v52 = vunpack.i.l.bf16 %v3875_v5  ;;  %v2976_v5 = vunpack.i.l.bf16 %v3907_v41 }
 0x7a3   : > { %v3012_v20 = vunpack.i.h.bf16 %v3010_v57  ;;  %v3011_v16 = vunpack.i.l.bf16 %v3010_v57 }
 0x7a4   : > { %v1909_v62 = vsel %vm954_vm8, %v2957_v53, %v2951_v56  ;;  %v1910_v3 = vsel %vm954_vm8, %v2951_v56, %v2952_v55  ;;  %v2897_v55 = vunpack.i.h.bf16 %v3877_v6  ;;  %v2896_v56 = vunpack.i.l.bf16 %v3877_v6 }
 0x7a5   : > { %v2005_v11 = vpack.c.bf16 %v1909_v62, %v1907_v61  ;;  %v2960_v9 = vpop.permute.xlu1 %2959  ;;  %v2006_v19 = vpack.c.bf16 %v1910_v3, %v1908_v63  ;;  %v1668_v34 = vsel %vm829_vm9, %v3011_v16, %v3012_v20  ;;  %v1667_v53 = vsel %vm829_vm9, %v2966_v25, %v3011_v16 }
 0x7a6   : > { %v2962_v17 = vunpack.i.h.bf16 %v2960_v9  ;;  %v2961_v18 = vunpack.i.l.bf16 %v2960_v9  ;;  %v3929_v21 = vpop.permute.xlu0 %3014  ;;  %v1711_v61 = vsel %vm854_vm13, %v2891_v52, %v2931_v28  ;;  %v2506_v62 = vpack.c.bf16 %v1714_v35, %v1712_v43  ;;  %v4012_v52 = vld [vmem:[%s3394_s18 + $0x18] sm:$0xff] }
 0x7a7   : > { %2109 = vmatprep.subr.bf16.mxu1 %v2006_v19  ;;  %v2937_v63 = vunpack.i.h.bf16 %v3913_v42  ;;  %v2936_v3 = vunpack.i.l.bf16 %v3913_v42  ;;  %v1713_v6 = vsel %vm854_vm13, %v2892_v1, %v2886_v32  ;;  %v1946_v16 = vsel %vm975_vm15, %v2896_v56, %v2897_v55 }
 0x7a8   : > { %v1670_v30 = vsel %vm829_vm9, %v2961_v18, %v2962_v17  ;;  %2110 = vmatpush1.bf16.msra.mxu1 %v2005_v11  ;;  %v1669_v46 = vsel %vm829_vm9, %v2967_v36, %v2961_v18  ;;  %v2509_v41 = vpack.c.bf16 %v1713_v6, %v1711_v61  ;;  %v2902_v17 = vunpack.i.h.bf16 %v3879_v7 }
 0x7a9   : > { %v2970_v31 = vpop.permute.xlu1 %2969  ;;  %2495 = vmatprep.subr.msk.bf16.mxu1 %vm3548_vm11, %v2494_v26  ;;  %v2500_v47 = vpack.c.bf16 %v1670_v30, %v1668_v34  ;;  %v2503_v57 = vpack.c.bf16 %v1669_v46, %v1667_v53  ;;  %v1944_v26 = vsel %vm975_vm15, %v2936_v3, %v2937_v63  ;;  %v2942_v28 = vunpack.i.h.bf16 %v3915_v44 }
 0x7aa   : > { %v3030_v39 = vpop.permute.xlu0 %3029  ;;  %v2972_v48 = vunpack.i.h.bf16 %v2970_v31  ;;  %v2971_v49 = vunpack.i.l.bf16 %v2970_v31  ;;  %v2941_v30 = vunpack.i.l.bf16 %v3915_v44  ;;  %v2906_v7 = vunpack.i.l.bf16 %v3881_v8 }
 0x7ab   : > { %v3032_v50 = vunpack.i.h.bf16 %v3030_v39  ;;  %v3031_v51 = vunpack.i.l.bf16 %v3030_v39  ;;  %v2907_v39 = vunpack.i.h.bf16 %v3881_v8  ;;  %v1943_v25 = vsel %vm975_vm15, %v2901_v27, %v2936_v3 }
 0x7ac   : > { %2498 = vmatpush1.bf16.msk.msra.mxu1 %vm3566_vm14, %v2497_v24  ;;  %v1718_v60 = vsel %vm854_vm13, %v2971_v49, %v2972_v48  ;;  %v1717_v9 = vsel %vm854_vm13, %v2977_v59, %v2971_v49  ;;  %v2016_v44 = vpack.c.bf16 %v1946_v16, %v1944_v26  ;;  %v2912_v43 = vunpack.i.h.bf16 %v3883_v10 }
 0x7ad   : > { %v3950_v54 = vpop.permute.xlu1 %2979  ;;  %2501 = vmatprep.subr.msk.bf16.mxu1 %vm3548_vm11, %v2500_v47  ;;  %v1716_v0 = vsel %vm854_vm13, %v3031_v51, %v3032_v50  ;;  %v1715_v19 = vsel %vm854_vm13, %v2976_v5, %v3031_v51  ;;  %v1945_v48 = vsel %vm975_vm15, %v2902_v17, %v2896_v56  ;;  %v2986_v49 = vunpack.i.l.bf16 %v3911_v29 }
 0x7ae   : > { %v3957_v58 = vpop.permute.xlu0 %3034  ;;  %v2512_v20 = vpack.c.bf16 %v1718_v60, %v1716_v0  ;;  %v2515_v4 = vpack.c.bf16 %v1717_v9, %v1715_v19  ;;  %v2982_v31 = vunpack.i.h.bf16 %v3950_v54  ;;  %v2981_v37 = vunpack.i.l.bf16 %v3950_v54 }
 0x7af   : > { %v2015_v12 = vpack.c.bf16 %v1945_v48, %v1943_v25  ;;  %v2911_v54 = vunpack.i.l.bf16 %v3883_v10  ;;  %v2987_v35 = vunpack.i.h.bf16 %v3911_v29  ;;  %v1761_v59 = vsel %vm879_vm2, %v2912_v43, %v2906_v7 }
 0x7b0   : > { %2504 = vmatpush1.bf16.msk.msra.mxu1 %vm3566_vm14, %v2503_v57  ;;  %v1950_v2 = vsel %vm975_vm15, %v2981_v37, %v2982_v31  ;;  %v1762_v57 = vsel %vm879_vm2, %v2906_v7, %v2907_v39  ;;  %v3017_v19 = vunpack.i.h.bf16 %v3929_v21  ;;  %v3002_v27 = vunpack.i.h.bf16 %v3917_v45 }
 0x7b1   : > { %v3969_v11 = vpop.permute.xlu1 %2989  ;;  %2507 = vmatprep.subr.msk.bf16.mxu1 %vm3472_vm5, %v2506_v62  ;;  %v1759_v62 = vsel %vm879_vm2, %v2911_v54, %v2941_v30  ;;  %v1949_v10 = vsel %vm975_vm15, %v2987_v35, %v2981_v37  ;;  %v3037_v39 = vunpack.i.h.bf16 %v3957_v58  ;;  %v3181_v35 = vld [vmem:[%s3394_s18] sm:$0xff] }
 0x7b2   : > { %v3050_v42 = vpop.permute.xlu0 %3049  ;;  %v2992_v29 = vunpack.i.h.bf16 %v3969_v11  ;;  %v2991_v60 = vunpack.i.l.bf16 %v3969_v11  ;;  %v2521_v11 = vpack.c.bf16 %v1761_v59, %v1759_v62 }
 0x7b3   : > { %v3052_v18 = vunpack.i.h.bf16 %v3050_v42  ;;  %v3051_v22 = vunpack.i.l.bf16 %v3050_v42  ;;  %v3016_v42 = vunpack.i.l.bf16 %v3929_v21 }
 0x7b4   : > { %2510 = vmatpush1.bf16.msk.msra.mxu1 %vm3482_vm7, %v2509_v41  ;;  %v1766_v21 = vsel %vm879_vm2, %v2991_v60, %v2992_v29 }
 0x7b5   : > { %v3005_v36 = vpop.permute.xlu1 %3004  ;;  %2513 = vmatprep.subr.msk.bf16.mxu1 %vm3472_vm5, %v2512_v20  ;;  %v1948_v8 = vsel %vm975_vm15, %v3051_v22, %v3052_v18  ;;  %v1947_v55 = vsel %vm975_vm15, %v2986_v49, %v3051_v22 }
 0x7b6   : > { %v3007_v32 = vunpack.i.h.bf16 %v3005_v36  ;;  %v3006_v24 = vunpack.i.l.bf16 %v3005_v36  ;;  %v3987_v34 = vpop.permute.xlu0 %3054  ;;  %v2018_v56 = vpack.c.bf16 %v1950_v2, %v1948_v8  ;;  %v2017_v0 = vpack.c.bf16 %v1949_v10, %v1947_v55  ;;  %v3109_v2 = vld [vmem:[%s4183_s4 + $0x8] ss:$12 sps:$4 sm:$0xff]  }
 0x7b7   : > { %v3182_v55 = vld [vmem:[%s3394_s18 + $0x10] sm:$0xff]  ;;  %v3057_v59 = vunpack.i.h.bf16 %v3987_v34  ;;  %v3056_v38 = vunpack.i.l.bf16 %v3987_v34 }
 0x7b8   : > { %v1855_v46 = vsel %vm929_vm10, %v3006_v24, %v2946_v14  ;;  %v1857_v47 = vsel %vm929_vm10, %v3007_v32, %v2916_v15  ;;  %2516 = vmatpush1.bf16.msk.msra.mxu1 %vm3482_vm7, %v2515_v4  ;;  %v1760_v14 = vsel %vm879_vm2, %v2941_v30, %v2942_v28  ;;  %v4009_v15 = vld [vmem:[%s3394_s18 + $0x8] sm:$0xff]  ;;  %v3001_v28 = vunpack.i.l.bf16 %v3917_v45  ;;  %s2416_s18 = sshll.u32 %s473_s8, 6 }
 0x7b9   : > { %v2545_v50 = vpack.c.bf16 %v1857_v47, %v1855_v46  ;;  %v4004_v51 = vpop.permute.xlu1 %3019  ;;  %2119 = vmatprep.subr.bf16.mxu1 %v2016_v44  ;;  %v2214_v53 = vpack.c.bf16 %v4012_v52, %v4009_v15  ;;  %v2518_v63 = vpack.c.bf16 %v1762_v57, %v1760_v14  ;;  %v1808_v24 = vsel %vm904_vm4, %v3016_v42, %v3017_v19  ;;  %s4117_s9 = scalar_lea.vmem [#allocation4], %s2416_s18 }
 0x7ba   : > { %v3065_v1 = vpop.permute.xlu0 %3064  ;;  %v3022_v17 = vunpack.i.h.bf16 %v4004_v51  ;;  %v3021_v18 = vunpack.i.l.bf16 %v4004_v51  ;;  %v3036_v45 = vunpack.i.l.bf16 %v3957_v58  ;;  %v1765_v47 = vsel %vm879_vm2, %v3002_v27, %v2991_v60  ;;  %s2338_s15 = sshll.u32 %s4117_s9, 4  ;;  %s4131_s15 = int_to_ptr.vmem [resolvable:$true] %s2338_s15 }
 0x7bb   : > { %2546 = vmatpush1.bf16.msk.msra.mxu0 %vm3566_vm14, %v2545_v50  ;;  %v3067_v5 = vunpack.i.h.bf16 %v3065_v1  ;;  %v3066_v61 = vunpack.i.l.bf16 %v3065_v1  ;;  %s3183_s26 = scalar_lea.vmem %s4131_s15, 1024  ;;  %p3190_p0 = scmp.lt.s32.totalorder %s4131_s15, %s3188_s20 }
 0x7bc   : > { %2120 = vmatpush1.bf16.msra.mxu1 %v2015_v12  ;;  %v1810_v44 = vsel %vm904_vm4, %v3021_v18, %v3022_v17  ;;  %v1809_v50 = vsel %vm904_vm4, %v3037_v39, %v3021_v18  ;;  %v1807_v23 = vsel %vm904_vm4, %v3036_v45, %v3016_v42  ;;  %v3111_v39 = vld [vmem:[%s4183_s4] ss:$12 sps:$4 sm:$0xff]   ;;  %v3118_v45 = vld [vmem:[%s4183_s4 + $0x18] ss:$12 sps:$4 sm:$0xff]   ;;  %p3184_p11 = scmp.ne.s32.totalorder %s4131_s15, %s3183_s26  ;;  %p3191_p1 = scmp.lt.s32.totalorder %s3189_s25, %s3183_s26 }
 0x7bd   : > { %v3025_v3 = vpop.permute.xlu1 %3024  ;;  %2121 = vmatprep.subr.bf16.mxu1 %v2018_v56  ;;  %v1764_v22 = vsel %vm879_vm2, %v3066_v61, %v3067_v5  ;;  %v1763_v7 = vsel %vm879_vm2, %v3001_v28, %v3066_v61  ;;  %v2530_v54 = vpack.c.bf16 %v1810_v44, %v1808_v24  ;;  %v2213_v56 = vpack.c.bf16 %v3182_v55, %v3181_v35  ;;  %v3114_v24 = vld [vmem:[%s4185_s6] sm:$0xff]  }
 0x7be   : > { %v3027_v6 = vunpack.i.h.bf16 %v3025_v3  ;;  %v3026_v41 = vunpack.i.l.bf16 %v3025_v3  ;;  %v3070_v9 = vpop.permute.xlu0 %3069  ;;  %v2524_v25 = vpack.c.bf16 %v1766_v21, %v1764_v22  ;;  %v2527_v51 = vpack.c.bf16 %v1765_v47, %v1763_v7  ;;  %v3115_v7 = vld [vmem:[%s4183_s4 + $0x1c] ss:$12 sps:$4 sm:$0xff]   ;;  %p3185_p12 = pnand %p3184_p11, %p3374_p5  ;;  %p3192_p2 = por %p3191_p1, %p3190_p0 }
 0x7bf   : > { %v3072_v20 = vunpack.i.h.bf16 %v3070_v9  ;;  %v3071_v16 = vunpack.i.l.bf16 %v3070_v9  ;;  %v2533_v5 = vpack.c.bf16 %v1809_v50, %v1807_v23 }
 0x7c0   : > { %v1862_v26 = vsel %vm929_vm10, %v3026_v41, %v3027_v6  ;;  %2122 = vmatpush1.bf16.msra.mxu1 %v2017_v0  ;;  %p3186_p13 = pneg %p3185_p12 }
 0x7c1   : > { %v1860_v30 = vsel %vm929_vm10, %v3071_v16, %v3072_v20  ;;  %v3040_v4 = vpop.permute.xlu1 %3039  ;;  %2519 = vmatprep.subr.msk.bf16.mxu1 %vm3548_vm11, %v2518_v63  ;;  %v3110_v20 = vld [vmem:[%s4183_s4 + $0x20] ss:$12 sps:$4 sm:$0xff]  }
 0x7c2   : > { %v2548_v36 = vpack.c.bf16 %v1862_v26, %v1860_v30  ;;  %v3042_v31 = vunpack.i.h.bf16 %v3040_v4  ;;  %v3041_v37 = vunpack.i.l.bf16 %v3040_v4  ;;  %v3075_v32 = vpop.permute.xlu0 %3074  ;;  %p3193_p3 = pnand %p3192_p2, %p3186_p13 }
 0x7c3   : > { %v3077_v48 = vunpack.i.h.bf16 %v3075_v32  ;;  %v3076_v49 = vunpack.i.l.bf16 %v3075_v32 }
 0x7c4   : > { %v1859_v43 = vsel %vm929_vm10, %v3041_v37, %v3071_v16  ;;  %v1861_v46 = vsel %vm929_vm10, %v3042_v31, %v3026_v41  ;;  %2522 = vmatpush1.bf16.msk.msra.mxu1 %vm3566_vm14, %v2521_v11  ;;  %2549 = vmatprep.subr.msk.bf16.mxu0 %vm3548_vm11, %v2548_v36 }
 0x7c5   : > { %v2551_v8 = vpack.c.bf16 %v1861_v46, %v1859_v43  ;;  %v3045_v58 = vpop.permute.xlu1 %3044  ;;  %2525 = vmatprep.subr.msk.bf16.mxu1 %vm3548_vm11, %v2524_v25  ;;  %v1812_v61 = vsel %vm904_vm4, %v3076_v49, %v3077_v48  ;;  %v1811_v0 = vsel %vm904_vm4, %v3056_v38, %v3076_v49  ;;  %v3117_v25 = vld [vmem:[%s4185_s6 + $0x8] sm:$0xff]  }
 0x7c6   : > { %v3047_v12 = vunpack.i.h.bf16 %v3045_v58  ;;  %v3046_v14 = vunpack.i.l.bf16 %v3045_v58  ;;  %v3080_v1 = vpop.permute.xlu0 %3079 }
 0x7c7   : > { %2552 = vmatpush1.bf16.msk.msra.mxu0 %vm3566_vm14, %v2551_v8  ;;  %v3082_v63 = vunpack.i.h.bf16 %v3080_v1  ;;  %v3081_v10 = vunpack.i.l.bf16 %v3080_v1 }
 0x7c8   : > { %v1814_v57 = vsel %vm904_vm4, %v3046_v14, %v3047_v12  ;;  %2528 = vmatpush1.bf16.msk.msra.mxu1 %vm3566_vm14, %v2527_v51  ;;  %2255 = vmatprep.subr.bf16.mxu0 %v2214_v53  ;;  %v1813_v15 = vsel %vm904_vm4, %v3057_v59, %v3046_v14 }
 0x7c9   : > { %v3060_v62 = vpop.permute.xlu1 %3059  ;;  %2531 = vmatprep.subr.msk.bf16.mxu1 %vm3472_vm5, %v2530_v54  ;;  %v2536_v52 = vpack.c.bf16 %v1814_v57, %v1812_v61  ;;  %v2539_v41 = vpack.c.bf16 %v1813_v15, %v1811_v0  ;;  %v1986_v42 = vsel %vm996_vm6, %v3081_v10, %v3082_v63 }
 0x7ca   : > { %v3062_v29 = vunpack.i.h.bf16 %v3060_v62  ;;  %v3061_v3 = vunpack.i.l.bf16 %v3060_v62  ;;  %v3095_v60 = vpop.permute.xlu0 %3094  ;;  %2553 = vmatmul.mubr.msk.bf16.vlgmr.msra.gmra.mrb[12].mxu0 %vm1204_vm12, %v3109_v2 }
 0x7cb   : > { %2256 = vmatpush1.bf16.msra.mxu0 %v2213_v56  ;;  %2198 = vmatprep.mubr.bf16.mxu0 %v3247_v13  ;;  %v3097_v16 = vunpack.i.h.bf16 %v3095_v60  ;;  %v3096_v18 = vunpack.i.l.bf16 %v3095_v60 }
 0x7cc   : > { %2534 = vmatpush1.bf16.msk.msra.mxu1 %vm3482_vm7, %v2533_v5  ;;  %v1984_v53 = vsel %vm996_vm6, %v3061_v3, %v3062_v29 }
 0x7cd   : > { %v3085_v6 = vpop.permute.xlu1 %3084  ;;  %2537 = vmatprep.subr.msk.bf16.mxu1 %vm3472_vm5, %v2536_v52  ;;  %v2028_v17 = vpack.c.bf16 %v1986_v42, %v1984_v53  ;;  %v1988_v31 = vsel %vm996_vm6, %v3096_v18, %v3097_v16 }
 0x7ce   : > { %v3087_v9 = vunpack.i.h.bf16 %v3085_v6  ;;  %v3086_v34 = vunpack.i.l.bf16 %v3085_v6  ;;  %v3100_v19 = vpop.permute.xlu0 %3099 }
 0x7cf   : > { %v3101_v11 = vunpack.i.l.bf16 %v3100_v19  ;;  %v3102_v28 = vunpack.i.h.bf16 %v3100_v19 }
 0x7d0   : > { %v1985_v22 = vsel %vm996_vm6, %v3087_v9, %v3081_v10  ;;  %v1983_v26 = vsel %vm996_vm6, %v3086_v34, %v3061_v3  ;;  %2540 = vmatpush1.bf16.msk.msra.mxu1 %vm3482_vm7, %v2539_v41 }
 0x7d1   : > { %v2027_v33 = vpack.c.bf16 %v1985_v22, %v1983_v26  ;;  %v3090_v27 = vpop.permute.xlu1 %3089  ;;  %2131 = vmatprep.subr.bf16.mxu1 %v2028_v17  ;;  %v1987_v21 = vsel %vm996_vm6, %v3101_v11, %v3096_v18 }
 0x7d2   : > { %v3092_v30 = vunpack.i.h.bf16 %v3090_v27  ;;  %v3091_v4 = vunpack.i.l.bf16 %v3090_v27  ;;  %2554 = vmatmul.mubr.msk.bf16.gmra.mrb[16].mxu0 %vm1204_vm12, %v3110_v20 }
 0x7d3   : > { %2287 = vmatprep.mubr.bf16.mxu0 %v3247_v13 }
 0x7d4   : > { %v1989_v36 = vsel %vm996_vm6, %v3102_v28, %v3091_v4  ;;  %2132 = vmatpush1.bf16.msra.mxu1 %v2027_v33  ;;  %v1990_v40 = vsel %vm996_vm6, %v3091_v4, %v3092_v30 }
 0x7d5   : > { %v2029_v37 = vpack.c.bf16 %v1989_v36, %v1987_v21  ;;  %v2030_v32 = vpack.c.bf16 %v1990_v40, %v1988_v31 }
 0x7d7   : > { %2133 = vmatprep.subr.bf16.mxu1 %v2030_v32 }
 0x7d8   : > { %2134 = vmatpush1.bf16.msra.mxu1 %v2029_v37 }
 0x7da   : > { %2557 = vmatmul.mubr.msk.bf16.vlgmr.msra.gmra.mrb[12].mxu0 %vm523_vm0, %v3114_v24 }
 0x7db   : > { %2136 = vmatmul.mubr.bf16.vlgmr.msra.gmra.mrb[8].mxu1 %v3111_v39  ;;  %2297 = vmatprep.mubr.bf16.mxu0 %v3247_v13 }
 0x7dc   : > { %2145 = vmatprep.mubr.bf16.mxu1 %v3115_v7 }
 0x7df   : > { %v2055_v43 = vpop.permute.xlu0 %2054 }
 0x7e2   : > { %2558 = vmatmul.mubr.msk.bf16.gmra.mrb[16].mxu0 %vm523_vm0, %v3117_v25  ;;  %v2050_v44 = vpop.permute.xlu1 %2049 }
 0x7e3   : > { %2146 = vmatmul.mubr.bf16.gmra.mrb[12].mxu1 %v3118_v45  ;;  %v2065_v47 = vpop.permute.xlu0 %2064 }
 0x7e6   : > { %v2060_v46 = vpop.permute.xlu1 %2059 }
 0x7e7   : > { %v2227_v55 = vpop.permute.xlu0 %2226 }
 0x7ea   : > { %v2222_v8 = vpop.permute.xlu1 %2221 }
 0x7eb   : > { %v2237_v19 = vpop.permute.xlu0 %2236 }
 0x7ee   : > { %v2232_v62 = vpop.permute.xlu1 %2231 }
 0x8ad   : > { %v2289_v48 = vpop.f32.mrb[12].mxu0 }
 0x8ae   : > { %v2137_v13 = vpop.f32.mrb[8].mxu1  ;;  %v2291_v49 = vpop.f32.mrb[13].mxu0 }
 0x8af   : > { %v2138_v58 = vadd.f32 %v2137_v13, %v2050_v44  ;;  %v2139_v50 = vpop.f32.mrb[9].mxu1  ;;  %v2293_v51 = vpop.f32.mrb[14].mxu0 }
 0x8b0   : > { %v2140_v12 = vadd.f32 %v2139_v50, %v2050_v44  ;;  %v2141_v14 = vpop.f32.mrb[10].mxu1  ;;  %v2295_v1 = vpop.f32.mrb[15].mxu0 }
 0x8b1   : > { %v2658_v2 = vadd.f32 %v2222_v8, %v2138_v58  ;;  %v2142_v54 = vadd.f32 %v2141_v14, %v2055_v43  ;;  %v2143_v35 = vpop.f32.mrb[11].mxu1 }
 0x8b2   : > { %v2661_v56 = vadd.f32 %v2222_v8, %v2140_v12  ;;  %v2144_v23 = vadd.f32 %v2143_v35, %v2055_v43 }
 0x8b3   : > { %v2659_v57 = vadd.f32 %v2658_v2, %v2289_v48  ;;  %v2664_v59 = vadd.f32 %v2227_v55, %v2142_v54 }
 0x8b4   : > { %v2662_v5 = vadd.f32 %v2661_v56, %v2291_v49  ;;  %v2667_v61 = vadd.f32 %v2227_v55, %v2144_v23 }
 0x8b5   : > { %2316 = vst [vmem:[%s4117_s9] sm:$0xff] %v2659_v57  ;;  %v2665_v63 = vadd.f32 %v2664_v59, %v2293_v51  ;;  %v2299_v10 = vpop.f32.mrb[16].mxu0 }
 0x8b6   : > { %2317 = vst [vmem:[%s4117_s9 + $0x8] sm:$0xff] %v2662_v5  ;;  %v2668_v29 = vadd.f32 %v2667_v61, %v2295_v1  ;;  %v2147_v3 = vpop.f32.mrb[12].mxu1  ;;  %v2301_v60 = vpop.f32.mrb[17].mxu0 }
 0x8b7   : > { %2318 = vst [vmem:[%s4117_s9 + $0x10] sm:$0xff] %v2665_v63  ;;  %v2148_v38 = vadd.f32 %v2147_v3, %v2060_v46  ;;  %v2149_v15 = vpop.f32.mrb[13].mxu1  ;;  %v2303_v52 = vpop.f32.mrb[18].mxu0 }
 0x8b8   : > { %2319 = vst [vmem:[%s4117_s9 + $0x18] sm:$0xff] %v2668_v29  ;;  %v2150_v53 = vadd.f32 %v2149_v15, %v2060_v46  ;;  %v2151_v0 = vpop.f32.mrb[14].mxu1  ;;  %v2305_v6 = vpop.f32.mrb[19].mxu0 }
 0x8b9   : > { %v2670_v41 = vadd.f32 %v2232_v62, %v2148_v38  ;;  %v2152_v9 = vadd.f32 %v2151_v0, %v2065_v47  ;;  %v2153_v34 = vpop.f32.mrb[15].mxu1 }
 0x8ba   : > { %v2673_v42 = vadd.f32 %v2232_v62, %v2150_v53  ;;  %v2154_v20 = vadd.f32 %v2153_v34, %v2065_v47 }
 0x8bb   : > { %v2671_v16 = vadd.f32 %v2670_v41, %v2299_v10  ;;  %v2676_v17 = vadd.f32 %v2237_v19, %v2152_v9 }
 0x8bc   : > { %v2674_v18 = vadd.f32 %v2673_v42, %v2301_v60  ;;  %v2679_v22 = vadd.f32 %v2237_v19, %v2154_v20 }
 0x8bd   : > { %2320 = vst [vmem:[%s4117_s9 + $0x20] sm:$0xff] %v2671_v16  ;;  %v2677_v26 = vadd.f32 %v2676_v17, %v2303_v52 }
 0x8be   : > { %2321 = vst [vmem:[%s4117_s9 + $0x28] sm:$0xff] %v2674_v18  ;;  %v2680_v11 = vadd.f32 %v2679_v22, %v2305_v6 }
 0x8bf   : > { %2322 = vst [vmem:[%s4117_s9 + $0x30] sm:$0xff] %v2677_v26 }
 0x8c0   : > { %2323 = vst [vmem:[%s4117_s9 + $0x38] sm:$0xff] %v2680_v11 }
 0x8c1   : > { %3196 = shalt.err (!%p3193_p3)
}
 0x8c2   : > { %s3197_s0 = scalar_lea.hbm %s4129_s21, 1024  ;;  %s3201_s9 = scalar_lea.hbm %s4193_s14, 2048 }
 0x8c3   : > { %p3198_p4 = scmp.ne.s32.totalorder %s4129_s21, %s3197_s0  ;;  %p3202_p9 = scmp.lt.u32.totalorder %s4129_s21, %s4193_s14 }
 0x8c4   : > { %p3203_p10 = scmp.lt.u32.totalorder %s3201_s9, %s3197_s0  ;;  %p3205_p12 = scmp.lt.u32.totalorder %s3197_s0, %s4129_s21 }
 0x8c5   : > { %p3199_p7 = pnand %p3198_p4, %p3374_p5 }
 0x8c6   : > { %p3204_p11 = por %p3203_p10, %p3202_p9 }
 0x8c7   : > { %p3200_p8 = pneg %p3199_p7 }
 0x8c8   : > { %p3206_p13 = por %p3205_p12, %p3204_p11 }
 0x8ca   : > { %p3207_p0 = pnand %p3206_p13, %p3200_p8 }
 0x8cc   : > { %3210 = shalt.err (!%p3207_p0)
}
 0x8cd   : > { %s3259_s22 = smov 256   ;;  %s3260_s26 = smov 16  }
 0x8ce   : > { %2689 = dma.vmem_to_hbm [thread:$0]  (%p3374_p5), %s4131_s15, 1024, %s4129_s21, %s4138_s17, %s3259_s22, %s3259_s22, %s3260_s26  }
 0x8cf PF: > { %p2695_p1 = scmp.ge.s32.totalorder %s3245_s16, 2  ;;  %s2353_s28 = sand.u32 1, %s3233_s29  }
 0x8d0   : > { %s2354_s20 = scalar_lea.sflag [#allocation5], %s2353_s28 }
 0x8d1   : > { %p2692_p2 = pnand %p2695_p1, %p3378_p6 }
 0x8d3   : > { %3228 = dma.done.wait (!%p2692_p2), %s2354_s20, 1024  }
 0x8d4   : > { %3230 = vsyncadd (!%p2692_p2), %s2354_s20, 4294966272  ;;  %s4243_s25 = sld [smem:[#allocation7_spill]]  ;;  %s4244_s15 = sld [smem:[#allocation8_spill]] }
 0x8d5   : > { %p24_p3 = scmp.ge.s32.totalorder %s3361_s19, 4   ;;  %s4245_s29 = smov %s3237_s30 }
 0x8d6   : > { %s4247_s16 = smov %s3361_s19 }
 0x8d7   :  { %26 = sbr.rel (!%p24_p3) target bundleno = 8 (0x8), region = 114 }
 0x8da   : > { %s4246_s30 = smov %s4243_s25 }
 0x8de   :  { %2359 = vsyncpa [#allocation5], 1 }
 0x8df   :  { %2361 = vsyncpa [#allocation5 + $0x1], 1 }

</bundles_post_ra>
